<compile_context>
chip_gen: v7x
topology: tpu7x:2x2x1
jax: 0.10.0
libtpu: 0.0.40
codegen_flags: <defaults>
</compile_context>

<pallas_src>
import jax
import jax.numpy as jnp
from jax import lax
from jax.experimental import pallas as pl
from jax.experimental.pallas import tpu as pltpu


# --------------------------------------------------------------------------- kernel
def _gru_kernel(x_ref, lens_ref, wih_ref, whh_ref, bgi_ref, bhn_ref,
                out_ref, hlast_ref, h_scratch):
    t_chunk, b_tile, d_p = x_ref.shape
    h_p = whh_ref.shape[0]
    tc = pl.program_id(1)                      # time-chunk index (recurrent axis)

    @pl.when(tc == 0)
    def _():                                   # new batch tile -> reset carried state
        h_scratch[...] = jnp.zeros_like(h_scratch)

    # ---- hoisted input projection for the whole chunk: one big MXU matmul ----
    x_chunk = x_ref[...].reshape(t_chunk * b_tile, d_p)         # bf16, row = t*b_tile + b
    gi = jnp.dot(x_chunk, wih_ref[...], preferred_element_type=jnp.float32)
    gi = gi + bgi_ref[...]                     # b_ih (+ b_hh for r,z) folded in, once per chunk

    whh = whh_ref[...]                         # (Hp, 3Hp) bf16, resident
    b_hn = bhn_ref[...]                        # (1, Hp)  f32
    lens = lens_ref[...]                       # (B_tile, 1) int32
    t0 = tc * t_chunk

    h = h_scratch[...]                         # (B_tile, Hp) f32 carried hidden state
    for i in range(t_chunk):                   # static unroll: LLO-visible inner loop
        gi_t = gi[i * b_tile:(i + 1) * b_tile, :]                     # (B_tile, 3Hp)
        gh = jnp.dot(h.astype(jnp.bfloat16), whh,
                     preferred_element_type=jnp.float32)              # (B_tile, 3Hp)
        r = jax.nn.sigmoid(gi_t[:, 0:h_p] + gh[:, 0:h_p])
        z = jax.nn.sigmoid(gi_t[:, h_p:2 * h_p] + gh[:, h_p:2 * h_p])
        n = jnp.tanh(gi_t[:, 2 * h_p:] + r * (gh[:, 2 * h_p:] + b_hn))
        h_new = n + z * (h - n)                                       # == (1-z)*n + z*h

        valid = lens > (t0 + i)                                       # (B_tile, 1)
        h = jnp.where(valid, h_new, h)                                # freeze past seq end
        out_ref[i] = jnp.where(valid, h_new, 0.0).astype(out_ref.dtype)

    h_scratch[...] = h

    @pl.when(tc == pl.num_programs(1) - 1)
    def _():
        hlast_ref[...] = h.astype(hlast_ref.dtype)


# --------------------------------------------------------------------------- wrapper
def _round_up(v, m):
    return (v + m - 1) // m * m


def _pack_gate_weight(w, in_p, h_p):
    """PyTorch (3H, In) gate-stacked weight -> padded (In_p, 3*H_p), gate blocks lane-aligned."""
    three_h, in_dim = w.shape
    h = three_h // 3
    w3 = jnp.transpose(w.reshape(3, h, in_dim), (2, 0, 1))            # (In, 3, H)
    w3 = jnp.pad(w3, ((0, in_p - in_dim), (0, 0), (0, h_p - h)))
    return w3.reshape(in_p, 3 * h_p)


def gru_encoder_forward(x, params, seq_length=None, *, time_chunk=16, batch_tile=None):
    """Pallas forward of GRU_Encoder_.forward.

    x: (B, T, D) float32 (batch_first), params: w_ih (3H,D), w_hh (3H,H), b_ih (3H,), b_hh (3H,)
    seq_length: optional (B,) int lengths.  Returns (output (B,T,H), h (1,B,H)).
    """
    B, T, D = x.shape
    H = params["w_hh"].shape[1]

    # padded geometry: 128 lanes on H/D, 16 sublanes (bf16) on batch
    h_p = _round_up(H, 128)
    d_p = _round_up(D, 128)
    b_tile = _round_up(B if batch_tile is None else min(batch_tile, B), 16)
    b_p = _round_up(B, b_tile)
    nb = b_p // b_tile
    t_c = min(max(int(time_chunk), 1), _round_up(T, 8))
    t_p = _round_up(T, t_c)
    nt = t_p // t_c

    # time-major padded bf16 input: pad + cast + transpose fuse into one materialization pass
    x_tm = jnp.transpose(x, (1, 0, 2)).astype(jnp.bfloat16)
    x_tm = jnp.pad(x_tm, ((0, t_p - T), (0, b_p - B), (0, d_p - D)))

    w_ih_p = _pack_gate_weight(params["w_ih"].astype(jnp.float32), d_p, h_p).astype(jnp.bfloat16)
    w_hh_p = _pack_gate_weight(params["w_hh"].astype(jnp.float32), h_p, h_p).astype(jnp.bfloat16)

    bi3 = params["b_ih"].reshape(3, H).astype(jnp.float32)
    bh3 = params["b_hh"].reshape(3, H).astype(jnp.float32)
    # r,z gate biases are purely additive -> fold b_hh into the precomputed gi bias
    b_gi = jnp.pad(jnp.stack([bi3[0] + bh3[0], bi3[1] + bh3[1], bi3[2]]),
                   ((0, 0), (0, h_p - H))).reshape(1, 3 * h_p)
    b_hn = jnp.pad(bh3[2][None, :], ((0, 0), (0, h_p - H)))           # (1, Hp)

    if seq_length is None:
        lens = jnp.full((B,), T, dtype=jnp.int32)
    else:
        lens = jnp.asarray(seq_length, dtype=jnp.int32).reshape(B)
    lens = jnp.pad(lens, (0, b_p - B)).reshape(b_p, 1)                # padded rows: len 0

    # rough VMEM budget (double-buffered blocks + gi temp), capped for v7x's 64 MiB VMEM
    est = (2 * t_c * b_tile * (2 * d_p + 4 * h_p)           # x + out blocks
           + 2 * 2 * 3 * h_p * (d_p + h_p)                  # weights (bf16)
           + 4 * t_c * b_tile * 3 * h_p                     # gi temp (f32)
           + 16 * b_tile * h_p + (1 << 20))
    vmem_limit = int(min(64 << 20, max(32 << 20, 4 * est)))

    out_tm, h_last = pl.pallas_call(
        _gru_kernel,
        out_shape=(
            jax.ShapeDtypeStruct((t_p, b_p, h_p), jnp.float32),
            jax.ShapeDtypeStruct((b_p, h_p), jnp.float32),
        ),
        grid_spec=pltpu.PrefetchScalarGridSpec(
            num_scalar_prefetch=0,
            grid=(nb, nt),
            in_specs=[
                pl.BlockSpec((t_c, b_tile, d_p), lambda b, t: (t, b, 0)),   # x time chunk
                pl.BlockSpec((b_tile, 1), lambda b, t: (b, 0)),             # lengths
                pl.BlockSpec((d_p, 3 * h_p), lambda b, t: (0, 0)),          # W_ih packed
                pl.BlockSpec((h_p, 3 * h_p), lambda b, t: (0, 0)),          # W_hh packed
                pl.BlockSpec((1, 3 * h_p), lambda b, t: (0, 0)),            # folded gi bias
                pl.BlockSpec((1, h_p), lambda b, t: (0, 0)),                # b_hn
            ],
            out_specs=[
                pl.BlockSpec((t_c, b_tile, h_p), lambda b, t: (t, b, 0)),   # output chunk
                pl.BlockSpec((b_tile, h_p), lambda b, t: (b, 0)),           # final hidden
            ],
            scratch_shapes=[pltpu.VMEM((b_tile, h_p), jnp.float32)],        # carried h
        ),
        compiler_params=pltpu.CompilerParams(
            dimension_semantics=("parallel", "arbitrary"),   # batch tiles parallel, time recurrent
            vmem_limit_bytes=vmem_limit,
        ),
    )(x_tm, lens, w_ih_p, w_hh_p, b_gi, b_hn)

    # un-pad + back to batch_first: single XLA copy pass (padding forces a copy anyway)
    output = jnp.transpose(out_tm[:T, :B, :H], (1, 0, 2))    # (B, T, H)
    h = h_last[:B, :H][None]                                 # (num_layers=1, B, H)
    return output, h
    # TODO(synk): pad_packed_sequence trims output to max(seq_length); here the padded tail
    # (zeros) is kept at full T when max(seq_length) < T.


# --------------------------------------------------------------------------- reference
def gru_encoder_reference(x, params, seq_length=None, matmul_dtype=jnp.float32):
    """Pure-JAX reference (same math as torch.nn.GRU, batch_first); matmul_dtype lets the
    reference mirror the kernel's bf16 matmul inputs (f32 accumulation / carried state)."""
    B, T, D = x.shape
    H = params["w_hh"].shape[1]
    w_ih_t = params["w_ih"].T.astype(matmul_dtype)
    w_hh_t = params["w_hh"].T.astype(matmul_dtype)
    b_ih = params["b_ih"].astype(jnp.float32)
    b_hh = params["b_hh"].astype(jnp.float32)
    lens = (jnp.full((B,), T, jnp.int32) if seq_length is None
            else jnp.asarray(seq_length, jnp.int32))

    def cell(h, inp):
        x_t, t = inp
        gi = jnp.dot(x_t.astype(matmul_dtype), w_ih_t,
                     preferred_element_type=jnp.float32) + b_ih
        gh = jnp.dot(h.astype(matmul_dtype), w_hh_t,
                     preferred_element_type=jnp.float32) + b_hh
        i_r, i_z, i_n = gi[:, :H], gi[:, H:2 * H], gi[:, 2 * H:]
        h_r, h_z, h_n = gh[:, :H], gh[:, H:2 * H], gh[:, 2 * H:]
        r = jax.nn.sigmoid(i_r + h_r)
        z = jax.nn.sigmoid(i_z + h_z)
        n = jnp.tanh(i_n + r * h_n)
        h_new = (1.0 - z) * n + z * h
        valid = (lens > t)[:, None]
        return jnp.where(valid, h_new, h), jnp.where(valid, h_new, 0.0)

    h0 = jnp.zeros((B, H), jnp.float32)
    h_last, outs = lax.scan(cell, h0, (jnp.transpose(x, (1, 0, 2)), jnp.arange(T)))
    return jnp.transpose(outs, (1, 0, 2)), h_last[None]


def init_params(key, input_size, hidden_size):
    """Deterministic init matching nn.GRU parameter shapes (U(-1/sqrt(H), 1/sqrt(H)))."""
    k1, k2, k3, k4 = jax.random.split(key, 4)
    s = 1.0 / jnp.sqrt(hidden_size)
    return {
        "w_ih": jax.random.uniform(k1, (3 * hidden_size, input_size), jnp.float32, -s, s),
        "w_hh": jax.random.uniform(k2, (3 * hidden_size, hidden_size), jnp.float32, -s, s),
        "b_ih": jax.random.uniform(k3, (3 * hidden_size,), jnp.float32, -s, s),
        "b_hh": jax.random.uniform(k4, (3 * hidden_size,), jnp.float32, -s, s),
    }


# --------------------------------------------------------------------------- demo / checks
if __name__ == "__main__":
    B, T, D, H = 2, 8, 16, 32
    key = jax.random.PRNGKey(0)
    kx, kp, kx2, kp2, kl2 = jax.random.split(key, 5)

    x = jax.random.normal(kx, (B, T, D), dtype=jnp.float32)
    params = init_params(kp, D, H)
    seq_length = jnp.array([T, T - 3], dtype=jnp.int32)   # variable lengths, max == T

    out, h = gru_encoder_forward(x, params, seq_length)
    out, h = jax.block_until_ready(out), jax.block_until_ready(h)
    assert out.shape == (B, T, H) and h.shape == (1, B, H)

    # exact-logic check against a reference with matching (bf16 matmul / f32 accum) precision
    out_bf, h_bf = gru_encoder_reference(x, params, seq_length, matmul_dtype=jnp.bfloat16)
    assert jnp.allclose(out, out_bf, atol=2e-3, rtol=2e-3)
    assert jnp.allclose(h, h_bf, atol=2e-3, rtol=2e-3)
    # semantic check against the pure-f32 (PyTorch-equivalent) reference
    out_f32, h_f32 = gru_encoder_reference(x, params, seq_length)
    assert jnp.allclose(out, out_f32, atol=5e-2, rtol=5e-2)
    assert jnp.allclose(h, h_f32, atol=5e-2, rtol=5e-2)

    # seq_length=None path (no packing in PyTorch)
    out2, h2 = gru_encoder_forward(x, params, None)
    jax.block_until_ready(out2)
    out2_bf, h2_bf = gru_encoder_reference(x, params, None, matmul_dtype=jnp.bfloat16)
    assert jnp.allclose(out2, out2_bf, atol=2e-3, rtol=2e-3)
    assert jnp.allclose(h2, h2_bf, atol=2e-3, rtol=2e-3)

    # odd shapes: exercises H/D/T padding and the batch-tiled (megacore-friendly) grid axis
    B2, T2, D2, H2 = 20, 10, 8, 24
    x2 = jax.random.normal(kx2, (B2, T2, D2), dtype=jnp.float32)
    params2 = init_params(kp2, D2, H2)
    lens2 = jax.random.randint(kl2, (B2,), 1, T2 + 1)
    o3, h3 = gru_encoder_forward(x2, params2, lens2, batch_tile=16)
    jax.block_until_ready(o3)
    o3_bf, h3_bf = gru_encoder_reference(x2, params2, lens2, matmul_dtype=jnp.bfloat16)
    assert o3.shape == (B2, T2, H2) and h3.shape == (1, B2, H2)
    assert jnp.allclose(o3, o3_bf, atol=2e-3, rtol=2e-3)
    assert jnp.allclose(h3, h3_bf, atol=2e-3, rtol=2e-3)

    print("KERNEL_OK")
</pallas_src>

<mosaic_0001>
module attributes {stable_mosaic.version = 11 : i64} {
  func.func @_gru_kernel(%arg0: i32, %arg1: i32, %arg2: memref<8x16x128xbf16, #tpu.memory_space<vmem>>, %arg3: memref<16x1xi32, #tpu.memory_space<vmem>>, %arg4: memref<128x384xbf16, #tpu.memory_space<vmem>>, %arg5: memref<128x384xbf16, #tpu.memory_space<vmem>>, %arg6: memref<1x384xf32, #tpu.memory_space<vmem>>, %arg7: memref<1x128xf32, #tpu.memory_space<vmem>>, %arg8: memref<8x16x128xf32, #tpu.memory_space<vmem>>, %arg9: memref<16x128xf32, #tpu.memory_space<vmem>>, %arg10: memref<16x128xf32, #tpu.memory_space<vmem>>) attributes {dimension_semantics = [#tpu.dimension_semantics<parallel>, #tpu.dimension_semantics<arbitrary>], iteration_bounds = array<i64: 1, 1>, scalar_prefetch = 0 : i64, scratch_operands = 1 : i64, tpu.core_type = #tpu.core_type<tc>, window_params = [{transform_indices = @transform_0, window_bounds = array<i64: 8, 16, 128>}, {transform_indices = @transform_1, window_bounds = array<i64: 16, 1>}, {pipeline_mode = #tpu.pipeline_mode<synchronous>, transform_indices = @transform_2, window_bounds = array<i64: 128, 384>}, {pipeline_mode = #tpu.pipeline_mode<synchronous>, transform_indices = @transform_3, window_bounds = array<i64: 128, 384>}, {pipeline_mode = #tpu.pipeline_mode<synchronous>, transform_indices = @transform_4, window_bounds = array<i64: 1, 384>}, {pipeline_mode = #tpu.pipeline_mode<synchronous>, transform_indices = @transform_5, window_bounds = array<i64: 1, 128>}, {transform_indices = @transform_6, window_bounds = array<i64: 8, 16, 128>}, {transform_indices = @transform_7, window_bounds = array<i64: 16, 128>}]} {
    %c0_i32 = arith.constant 0 : i32
    %0 = arith.cmpi eq, %arg1, %c0_i32 : i32
    %1 = arith.extui %0 : i1 to i32
    %c0_i32_0 = arith.constant 0 : i32
    %2 = arith.cmpi ne, %1, %c0_i32_0 : i32
    scf.if %2 {
      %cst_69 = arith.constant 0.000000e+00 : f32
      %355 = vector.broadcast %cst_69 : f32 to vector<16x128xf32>
      %c0_70 = arith.constant 0 : index
      %c0_71 = arith.constant 0 : index
      %356 = vector.load %arg10[%c0_70, %c0_71] : memref<16x128xf32, #tpu.memory_space<vmem>>, vector<16x128xf32>
      tpu.vector_store %arg10[%c0_70, %c0_71], %355 {strides = array<i32>} : memref<16x128xf32, #tpu.memory_space<vmem>>, vector<16x128xf32>,
    } else {
    }
    %c0 = arith.constant 0 : index
    %c0_1 = arith.constant 0 : index
    %c0_2 = arith.constant 0 : index
    %3 = vector.load %arg2[%c0, %c0_1, %c0_2] : memref<8x16x128xbf16, #tpu.memory_space<vmem>>, vector<8x16x128xbf16>
    %4 = vector.shape_cast %3 : vector<8x16x128xbf16> to vector<128x128xbf16>
    %c0_3 = arith.constant 0 : index
    %c0_4 = arith.constant 0 : index
    %5 = vector.load %arg4[%c0_3, %c0_4] : memref<128x384xbf16, #tpu.memory_space<vmem>>, vector<128x384xbf16>
    %cst = arith.constant dense<0.000000e+00> : vector<128x384xf32>
    %6 = tpu.matmul %4, %5, %cst {dimension_numbers = #tpu.dot_dimension_numbers<[1], [0], [0], [1], [0, 0, 1, 1], [], []>} : vector<128x128xbf16>, vector<128x384xbf16>, vector<128x384xf32> -> vector<128x384xf32>
    %c0_5 = arith.constant 0 : index
    %c0_6 = arith.constant 0 : index
    %7 = vector.load %arg6[%c0_5, %c0_6] : memref<1x384xf32, #tpu.memory_space<vmem>>, vector<1x384xf32>
    %8 = vector.broadcast %7 : vector<1x384xf32> to vector<128x384xf32>
    %9 = arith.addf %6, %8 : vector<128x384xf32>
    %c0_7 = arith.constant 0 : index
    %c0_8 = arith.constant 0 : index
    %10 = vector.load %arg5[%c0_7, %c0_8] : memref<128x384xbf16, #tpu.memory_space<vmem>>, vector<128x384xbf16>
    %c0_9 = arith.constant 0 : index
    %c0_10 = arith.constant 0 : index
    %11 = vector.load %arg7[%c0_9, %c0_10] : memref<1x128xf32, #tpu.memory_space<vmem>>, vector<1x128xf32>
    %c0_11 = arith.constant 0 : index
    %c0_12 = arith.constant 0 : index
    %12 = vector.load %arg3[%c0_11, %c0_12] : memref<16x1xi32, #tpu.memory_space<vmem>>, vector<16x1xi32>
    %c8_i32 = arith.constant 8 : i32
    %13 = arith.muli %arg1, %c8_i32 : i32
    %c0_13 = arith.constant 0 : index
    %c0_14 = arith.constant 0 : index
    %14 = vector.load %arg10[%c0_13, %c0_14] : memref<16x128xf32, #tpu.memory_space<vmem>>, vector<16x128xf32>
    %15 = vector.extract_strided_slice %9 {offsets = [0, 0], sizes = [16, 384], strides = [1, 1]} : vector<128x384xf32> to vector<16x384xf32>
    %16 = arith.truncf %14 : vector<16x128xf32> to vector<16x128xbf16>
    %cst_15 = arith.constant dense<0.000000e+00> : vector<16x384xf32>
    %17 = tpu.matmul %16, %10, %cst_15 {dimension_numbers = #tpu.dot_dimension_numbers<[1], [0], [0], [1], [0, 0, 1, 1], [], []>} : vector<16x128xbf16>, vector<128x384xbf16>, vector<16x384xf32> -> vector<16x384xf32>
    %18 = vector.extract_strided_slice %15 {offsets = [0, 0], sizes = [16, 128], strides = [1, 1]} : vector<16x384xf32> to vector<16x128xf32>
    %19 = vector.extract_strided_slice %17 {offsets = [0, 0], sizes = [16, 128], strides = [1, 1]} : vector<16x384xf32> to vector<16x128xf32>
    %20 = arith.addf %18, %19 : vector<16x128xf32>
    %21 = arith.negf %20 : vector<16x128xf32>
    %22 = math.exp %21 : vector<16x128xf32>
    %cst_16 = arith.constant 1.000000e+00 : f32
    %23 = vector.broadcast %cst_16 : f32 to vector<16x128xf32>
    %24 = arith.addf %23, %22 : vector<16x128xf32>
    %25 = arith.divf %23, %24 : vector<16x128xf32>
    %26 = vector.extract_strided_slice %15 {offsets = [0, 128], sizes = [16, 128], strides = [1, 1]} : vector<16x384xf32> to vector<16x128xf32>
    %27 = vector.extract_strided_slice %17 {offsets = [0, 128], sizes = [16, 128], strides = [1, 1]} : vector<16x384xf32> to vector<16x128xf32>
    %28 = arith.addf %26, %27 : vector<16x128xf32>
    %29 = arith.negf %28 : vector<16x128xf32>
    %30 = math.exp %29 : vector<16x128xf32>
    %cst_17 = arith.constant 1.000000e+00 : f32
    %31 = vector.broadcast %cst_17 : f32 to vector<16x128xf32>
    %32 = arith.addf %31, %30 : vector<16x128xf32>
    %33 = arith.divf %31, %32 : vector<16x128xf32>
    %34 = vector.extract_strided_slice %15 {offsets = [0, 256], sizes = [16, 128], strides = [1, 1]} : vector<16x384xf32> to vector<16x128xf32>
    %35 = vector.extract_strided_slice %17 {offsets = [0, 256], sizes = [16, 128], strides = [1, 1]} : vector<16x384xf32> to vector<16x128xf32>
    %36 = vector.broadcast %11 : vector<1x128xf32> to vector<16x128xf32>
    %37 = arith.addf %35, %36 : vector<16x128xf32>
    %38 = arith.mulf %25, %37 : vector<16x128xf32>
    %39 = arith.addf %34, %38 : vector<16x128xf32>
    %40 = math.tanh %39 : vector<16x128xf32>
    %41 = arith.subf %14, %40 : vector<16x128xf32>
    %42 = arith.mulf %33, %41 : vector<16x128xf32>
    %43 = arith.addf %40, %42 : vector<16x128xf32>
    %c0_i32_18 = arith.constant 0 : i32
    %44 = arith.addi %13, %c0_i32_18 : i32
    %45 = vector.broadcast %44 : i32 to vector<16x1xi32>
    %46 = arith.cmpi sgt, %12, %45 : vector<16x1xi32>
    %47 = vector.shape_cast %46 : vector<16x1xi1> to vector<16x1xi1>
    %48 = vector.broadcast %47 : vector<16x1xi1> to vector<16x128xi1>
    %49 = arith.select %48, %43, %14 : vector<16x128xi1>, vector<16x128xf32>
    %cst_19 = arith.constant 0.000000e+00 : f32
    %50 = vector.shape_cast %46 : vector<16x1xi1> to vector<16x1xi1>
    %51 = vector.broadcast %50 : vector<16x1xi1> to vector<16x128xi1>
    %52 = vector.broadcast %cst_19 : f32 to vector<16x128xf32>
    %53 = arith.select %51, %43, %52 : vector<16x128xi1>, vector<16x128xf32>
    %c0_20 = arith.constant 0 : index
    %c0_21 = arith.constant 0 : index
    %c0_22 = arith.constant 0 : index
    %54 = vector.load %arg8[%c0_20, %c0_21, %c0_22] : memref<8x16x128xf32, #tpu.memory_space<vmem>>, vector<1x16x128xf32>
    %55 = vector.shape_cast %54 : vector<1x16x128xf32> to vector<16x128xf32>
    %56 = vector.shape_cast %53 : vector<16x128xf32> to vector<1x16x128xf32>
    tpu.vector_store %arg8[%c0_20, %c0_21, %c0_22], %56 {strides = array<i32>} : memref<8x16x128xf32, #tpu.memory_space<vmem>>, vector<1x16x128xf32>,
    %57 = vector.extract_strided_slice %9 {offsets = [16, 0], sizes = [16, 384], strides = [1, 1]} : vector<128x384xf32> to vector<16x384xf32>
    %58 = arith.truncf %49 : vector<16x128xf32> to vector<16x128xbf16>
    %cst_23 = arith.constant dense<0.000000e+00> : vector<16x384xf32>
    %59 = tpu.matmul %58, %10, %cst_23 {dimension_numbers = #tpu.dot_dimension_numbers<[1], [0], [0], [1], [0, 0, 1, 1], [], []>} : vector<16x128xbf16>, vector<128x384xbf16>, vector<16x384xf32> -> vector<16x384xf32>
    %60 = vector.extract_strided_slice %57 {offsets = [0, 0], sizes = [16, 128], strides = [1, 1]} : vector<16x384xf32> to vector<16x128xf32>
    %61 = vector.extract_strided_slice %59 {offsets = [0, 0], sizes = [16, 128], strides = [1, 1]} : vector<16x384xf32> to vector<16x128xf32>
    %62 = arith.addf %60, %61 : vector<16x128xf32>
    %63 = arith.negf %62 : vector<16x128xf32>
    %64 = math.exp %63 : vector<16x128xf32>
    %cst_24 = arith.constant 1.000000e+00 : f32
    %65 = vector.broadcast %cst_24 : f32 to vector<16x128xf32>
    %66 = arith.addf %65, %64 : vector<16x128xf32>
    %67 = arith.divf %65, %66 : vector<16x128xf32>
    %68 = vector.extract_strided_slice %57 {offsets = [0, 128], sizes = [16, 128], strides = [1, 1]} : vector<16x384xf32> to vector<16x128xf32>
    %69 = vector.extract_strided_slice %59 {offsets = [0, 128], sizes = [16, 128], strides = [1, 1]} : vector<16x384xf32> to vector<16x128xf32>
    %70 = arith.addf %68, %69 : vector<16x128xf32>
    %71 = arith.negf %70 : vector<16x128xf32>
    %72 = math.exp %71 : vector<16x128xf32>
    %cst_25 = arith.constant 1.000000e+00 : f32
    %73 = vector.broadcast %cst_25 : f32 to vector<16x128xf32>
    %74 = arith.addf %73, %72 : vector<16x128xf32>
    %75 = arith.divf %73, %74 : vector<16x128xf32>
    %76 = vector.extract_strided_slice %57 {offsets = [0, 256], sizes = [16, 128], strides = [1, 1]} : vector<16x384xf32> to vector<16x128xf32>
    %77 = vector.extract_strided_slice %59 {offsets = [0, 256], sizes = [16, 128], strides = [1, 1]} : vector<16x384xf32> to vector<16x128xf32>
    %78 = vector.broadcast %11 : vector<1x128xf32> to vector<16x128xf32>
    %79 = arith.addf %77, %78 : vector<16x128xf32>
    %80 = arith.mulf %67, %79 : vector<16x128xf32>
    %81 = arith.addf %76, %80 : vector<16x128xf32>
    %82 = math.tanh %81 : vector<16x128xf32>
    %83 = arith.subf %49, %82 : vector<16x128xf32>
    %84 = arith.mulf %75, %83 : vector<16x128xf32>
    %85 = arith.addf %82, %84 : vector<16x128xf32>
    %c1_i32 = arith.constant 1 : i32
    %86 = arith.addi %13, %c1_i32 : i32
    %87 = vector.broadcast %86 : i32 to vector<16x1xi32>
    %88 = arith.cmpi sgt, %12, %87 : vector<16x1xi32>
    %89 = vector.shape_cast %88 : vector<16x1xi1> to vector<16x1xi1>
    %90 = vector.broadcast %89 : vector<16x1xi1> to vector<16x128xi1>
    %91 = arith.select %90, %85, %49 : vector<16x128xi1>, vector<16x128xf32>
    %cst_26 = arith.constant 0.000000e+00 : f32
    %92 = vector.shape_cast %88 : vector<16x1xi1> to vector<16x1xi1>
    %93 = vector.broadcast %92 : vector<16x1xi1> to vector<16x128xi1>
    %94 = vector.broadcast %cst_26 : f32 to vector<16x128xf32>
    %95 = arith.select %93, %85, %94 : vector<16x128xi1>, vector<16x128xf32>
    %c1 = arith.constant 1 : index
    %c0_27 = arith.constant 0 : index
    %c0_28 = arith.constant 0 : index
    %96 = vector.load %arg8[%c1, %c0_27, %c0_28] : memref<8x16x128xf32, #tpu.memory_space<vmem>>, vector<1x16x128xf32>
    %97 = vector.shape_cast %96 : vector<1x16x128xf32> to vector<16x128xf32>
    %98 = vector.shape_cast %95 : vector<16x128xf32> to vector<1x16x128xf32>
    tpu.vector_store %arg8[%c1, %c0_27, %c0_28], %98 {strides = array<i32>} : memref<8x16x128xf32, #tpu.memory_space<vmem>>, vector<1x16x128xf32>,
    %99 = vector.extract_strided_slice %9 {offsets = [32, 0], sizes = [16, 384], strides = [1, 1]} : vector<128x384xf32> to vector<16x384xf32>
    %100 = arith.truncf %91 : vector<16x128xf32> to vector<16x128xbf16>
    %cst_29 = arith.constant dense<0.000000e+00> : vector<16x384xf32>
    %101 = tpu.matmul %100, %10, %cst_29 {dimension_numbers = #tpu.dot_dimension_numbers<[1], [0], [0], [1], [0, 0, 1, 1], [], []>} : vector<16x128xbf16>, vector<128x384xbf16>, vector<16x384xf32> -> vector<16x384xf32>
    %102 = vector.extract_strided_slice %99 {offsets = [0, 0], sizes = [16, 128], strides = [1, 1]} : vector<16x384xf32> to vector<16x128xf32>
    %103 = vector.extract_strided_slice %101 {offsets = [0, 0], sizes = [16, 128], strides = [1, 1]} : vector<16x384xf32> to vector<16x128xf32>
    %104 = arith.addf %102, %103 : vector<16x128xf32>
    %105 = arith.negf %104 : vector<16x128xf32>
    %106 = math.exp %105 : vector<16x128xf32>
    %cst_30 = arith.constant 1.000000e+00 : f32
    %107 = vector.broadcast %cst_30 : f32 to vector<16x128xf32>
    %108 = arith.addf %107, %106 : vector<16x128xf32>
    %109 = arith.divf %107, %108 : vector<16x128xf32>
    %110 = vector.extract_strided_slice %99 {offsets = [0, 128], sizes = [16, 128], strides = [1, 1]} : vector<16x384xf32> to vector<16x128xf32>
    %111 = vector.extract_strided_slice %101 {offsets = [0, 128], sizes = [16, 128], strides = [1, 1]} : vector<16x384xf32> to vector<16x128xf32>
    %112 = arith.addf %110, %111 : vector<16x128xf32>
    %113 = arith.negf %112 : vector<16x128xf32>
    %114 = math.exp %113 : vector<16x128xf32>
    %cst_31 = arith.constant 1.000000e+00 : f32
    %115 = vector.broadcast %cst_31 : f32 to vector<16x128xf32>
    %116 = arith.addf %115, %114 : vector<16x128xf32>
    %117 = arith.divf %115, %116 : vector<16x128xf32>
    %118 = vector.extract_strided_slice %99 {offsets = [0, 256], sizes = [16, 128], strides = [1, 1]} : vector<16x384xf32> to vector<16x128xf32>
    %119 = vector.extract_strided_slice %101 {offsets = [0, 256], sizes = [16, 128], strides = [1, 1]} : vector<16x384xf32> to vector<16x128xf32>
    %120 = vector.broadcast %11 : vector<1x128xf32> to vector<16x128xf32>
    %121 = arith.addf %119, %120 : vector<16x128xf32>
    %122 = arith.mulf %109, %121 : vector<16x128xf32>
    %123 = arith.addf %118, %122 : vector<16x128xf32>
    %124 = math.tanh %123 : vector<16x128xf32>
    %125 = arith.subf %91, %124 : vector<16x128xf32>
    %126 = arith.mulf %117, %125 : vector<16x128xf32>
    %127 = arith.addf %124, %126 : vector<16x128xf32>
    %c2_i32 = arith.constant 2 : i32
    %128 = arith.addi %13, %c2_i32 : i32
    %129 = vector.broadcast %128 : i32 to vector<16x1xi32>
    %130 = arith.cmpi sgt, %12, %129 : vector<16x1xi32>
    %131 = vector.shape_cast %130 : vector<16x1xi1> to vector<16x1xi1>
    %132 = vector.broadcast %131 : vector<16x1xi1> to vector<16x128xi1>
    %133 = arith.select %132, %127, %91 : vector<16x128xi1>, vector<16x128xf32>
    %cst_32 = arith.constant 0.000000e+00 : f32
    %134 = vector.shape_cast %130 : vector<16x1xi1> to vector<16x1xi1>
    %135 = vector.broadcast %134 : vector<16x1xi1> to vector<16x128xi1>
    %136 = vector.broadcast %cst_32 : f32 to vector<16x128xf32>
    %137 = arith.select %135, %127, %136 : vector<16x128xi1>, vector<16x128xf32>
    %c2 = arith.constant 2 : index
    %c0_33 = arith.constant 0 : index
    %c0_34 = arith.constant 0 : index
    %138 = vector.load %arg8[%c2, %c0_33, %c0_34] : memref<8x16x128xf32, #tpu.memory_space<vmem>>, vector<1x16x128xf32>
    %139 = vector.shape_cast %138 : vector<1x16x128xf32> to vector<16x128xf32>
    %140 = vector.shape_cast %137 : vector<16x128xf32> to vector<1x16x128xf32>
    tpu.vector_store %arg8[%c2, %c0_33, %c0_34], %140 {strides = array<i32>} : memref<8x16x128xf32, #tpu.memory_space<vmem>>, vector<1x16x128xf32>,
    %141 = vector.extract_strided_slice %9 {offsets = [48, 0], sizes = [16, 384], strides = [1, 1]} : vector<128x384xf32> to vector<16x384xf32>
    %142 = arith.truncf %133 : vector<16x128xf32> to vector<16x128xbf16>
    %cst_35 = arith.constant dense<0.000000e+00> : vector<16x384xf32>
    %143 = tpu.matmul %142, %10, %cst_35 {dimension_numbers = #tpu.dot_dimension_numbers<[1], [0], [0], [1], [0, 0, 1, 1], [], []>} : vector<16x128xbf16>, vector<128x384xbf16>, vector<16x384xf32> -> vector<16x384xf32>
    %144 = vector.extract_strided_slice %141 {offsets = [0, 0], sizes = [16, 128], strides = [1, 1]} : vector<16x384xf32> to vector<16x128xf32>
    %145 = vector.extract_strided_slice %143 {offsets = [0, 0], sizes = [16, 128], strides = [1, 1]} : vector<16x384xf32> to vector<16x128xf32>
    %146 = arith.addf %144, %145 : vector<16x128xf32>
    %147 = arith.negf %146 : vector<16x128xf32>
    %148 = math.exp %147 : vector<16x128xf32>
    %cst_36 = arith.constant 1.000000e+00 : f32
    %149 = vector.broadcast %cst_36 : f32 to vector<16x128xf32>
    %150 = arith.addf %149, %148 : vector<16x128xf32>
    %151 = arith.divf %149, %150 : vector<16x128xf32>
    %152 = vector.extract_strided_slice %141 {offsets = [0, 128], sizes = [16, 128], strides = [1, 1]} : vector<16x384xf32> to vector<16x128xf32>
    %153 = vector.extract_strided_slice %143 {offsets = [0, 128], sizes = [16, 128], strides = [1, 1]} : vector<16x384xf32> to vector<16x128xf32>
    %154 = arith.addf %152, %153 : vector<16x128xf32>
    %155 = arith.negf %154 : vector<16x128xf32>
    %156 = math.exp %155 : vector<16x128xf32>
    %cst_37 = arith.constant 1.000000e+00 : f32
    %157 = vector.broadcast %cst_37 : f32 to vector<16x128xf32>
    %158 = arith.addf %157, %156 : vector<16x128xf32>
    %159 = arith.divf %157, %158 : vector<16x128xf32>
    %160 = vector.extract_strided_slice %141 {offsets = [0, 256], sizes = [16, 128], strides = [1, 1]} : vector<16x384xf32> to vector<16x128xf32>
    %161 = vector.extract_strided_slice %143 {offsets = [0, 256], sizes = [16, 128], strides = [1, 1]} : vector<16x384xf32> to vector<16x128xf32>
    %162 = vector.broadcast %11 : vector<1x128xf32> to vector<16x128xf32>
    %163 = arith.addf %161, %162 : vector<16x128xf32>
    %164 = arith.mulf %151, %163 : vector<16x128xf32>
    %165 = arith.addf %160, %164 : vector<16x128xf32>
    %166 = math.tanh %165 : vector<16x128xf32>
    %167 = arith.subf %133, %166 : vector<16x128xf32>
    %168 = arith.mulf %159, %167 : vector<16x128xf32>
    %169 = arith.addf %166, %168 : vector<16x128xf32>
    %c3_i32 = arith.constant 3 : i32
    %170 = arith.addi %13, %c3_i32 : i32
    %171 = vector.broadcast %170 : i32 to vector<16x1xi32>
    %172 = arith.cmpi sgt, %12, %171 : vector<16x1xi32>
    %173 = vector.shape_cast %172 : vector<16x1xi1> to vector<16x1xi1>
    %174 = vector.broadcast %173 : vector<16x1xi1> to vector<16x128xi1>
    %175 = arith.select %174, %169, %133 : vector<16x128xi1>, vector<16x128xf32>
    %cst_38 = arith.constant 0.000000e+00 : f32
    %176 = vector.shape_cast %172 : vector<16x1xi1> to vector<16x1xi1>
    %177 = vector.broadcast %176 : vector<16x1xi1> to vector<16x128xi1>
    %178 = vector.broadcast %cst_38 : f32 to vector<16x128xf32>
    %179 = arith.select %177, %169, %178 : vector<16x128xi1>, vector<16x128xf32>
    %c3 = arith.constant 3 : index
    %c0_39 = arith.constant 0 : index
    %c0_40 = arith.constant 0 : index
    %180 = vector.load %arg8[%c3, %c0_39, %c0_40] : memref<8x16x128xf32, #tpu.memory_space<vmem>>, vector<1x16x128xf32>
    %181 = vector.shape_cast %180 : vector<1x16x128xf32> to vector<16x128xf32>
    %182 = vector.shape_cast %179 : vector<16x128xf32> to vector<1x16x128xf32>
    tpu.vector_store %arg8[%c3, %c0_39, %c0_40], %182 {strides = array<i32>} : memref<8x16x128xf32, #tpu.memory_space<vmem>>, vector<1x16x128xf32>,
    %183 = vector.extract_strided_slice %9 {offsets = [64, 0], sizes = [16, 384], strides = [1, 1]} : vector<128x384xf32> to vector<16x384xf32>
    %184 = arith.truncf %175 : vector<16x128xf32> to vector<16x128xbf16>
    %cst_41 = arith.constant dense<0.000000e+00> : vector<16x384xf32>
    %185 = tpu.matmul %184, %10, %cst_41 {dimension_numbers = #tpu.dot_dimension_numbers<[1], [0], [0], [1], [0, 0, 1, 1], [], []>} : vector<16x128xbf16>, vector<128x384xbf16>, vector<16x384xf32> -> vector<16x384xf32>
    %186 = vector.extract_strided_slice %183 {offsets = [0, 0], sizes = [16, 128], strides = [1, 1]} : vector<16x384xf32> to vector<16x128xf32>
    %187 = vector.extract_strided_slice %185 {offsets = [0, 0], sizes = [16, 128], strides = [1, 1]} : vector<16x384xf32> to vector<16x128xf32>
    %188 = arith.addf %186, %187 : vector<16x128xf32>
    %189 = arith.negf %188 : vector<16x128xf32>
    %190 = math.exp %189 : vector<16x128xf32>
    %cst_42 = arith.constant 1.000000e+00 : f32
    %191 = vector.broadcast %cst_42 : f32 to vector<16x128xf32>
    %192 = arith.addf %191, %190 : vector<16x128xf32>
    %193 = arith.divf %191, %192 : vector<16x128xf32>
    %194 = vector.extract_strided_slice %183 {offsets = [0, 128], sizes = [16, 128], strides = [1, 1]} : vector<16x384xf32> to vector<16x128xf32>
    %195 = vector.extract_strided_slice %185 {offsets = [0, 128], sizes = [16, 128], strides = [1, 1]} : vector<16x384xf32> to vector<16x128xf32>
    %196 = arith.addf %194, %195 : vector<16x128xf32>
    %197 = arith.negf %196 : vector<16x128xf32>
    %198 = math.exp %197 : vector<16x128xf32>
    %cst_43 = arith.constant 1.000000e+00 : f32
    %199 = vector.broadcast %cst_43 : f32 to vector<16x128xf32>
    %200 = arith.addf %199, %198 : vector<16x128xf32>
    %201 = arith.divf %199, %200 : vector<16x128xf32>
    %202 = vector.extract_strided_slice %183 {offsets = [0, 256], sizes = [16, 128], strides = [1, 1]} : vector<16x384xf32> to vector<16x128xf32>
    %203 = vector.extract_strided_slice %185 {offsets = [0, 256], sizes = [16, 128], strides = [1, 1]} : vector<16x384xf32> to vector<16x128xf32>
    %204 = vector.broadcast %11 : vector<1x128xf32> to vector<16x128xf32>
    %205 = arith.addf %203, %204 : vector<16x128xf32>
    %206 = arith.mulf %193, %205 : vector<16x128xf32>
    %207 = arith.addf %202, %206 : vector<16x128xf32>
    %208 = math.tanh %207 : vector<16x128xf32>
    %209 = arith.subf %175, %208 : vector<16x128xf32>
    %210 = arith.mulf %201, %209 : vector<16x128xf32>
    %211 = arith.addf %208, %210 : vector<16x128xf32>
    %c4_i32 = arith.constant 4 : i32
    %212 = arith.addi %13, %c4_i32 : i32
    %213 = vector.broadcast %212 : i32 to vector<16x1xi32>
    %214 = arith.cmpi sgt, %12, %213 : vector<16x1xi32>
    %215 = vector.shape_cast %214 : vector<16x1xi1> to vector<16x1xi1>
    %216 = vector.broadcast %215 : vector<16x1xi1> to vector<16x128xi1>
    %217 = arith.select %216, %211, %175 : vector<16x128xi1>, vector<16x128xf32>
    %cst_44 = arith.constant 0.000000e+00 : f32
    %218 = vector.shape_cast %214 : vector<16x1xi1> to vector<16x1xi1>
    %219 = vector.broadcast %218 : vector<16x1xi1> to vector<16x128xi1>
    %220 = vector.broadcast %cst_44 : f32 to vector<16x128xf32>
    %221 = arith.select %219, %211, %220 : vector<16x128xi1>, vector<16x128xf32>
    %c4 = arith.constant 4 : index
    %c0_45 = arith.constant 0 : index
    %c0_46 = arith.constant 0 : index
    %222 = vector.load %arg8[%c4, %c0_45, %c0_46] : memref<8x16x128xf32, #tpu.memory_space<vmem>>, vector<1x16x128xf32>
    %223 = vector.shape_cast %222 : vector<1x16x128xf32> to vector<16x128xf32>
    %224 = vector.shape_cast %221 : vector<16x128xf32> to vector<1x16x128xf32>
    tpu.vector_store %arg8[%c4, %c0_45, %c0_46], %224 {strides = array<i32>} : memref<8x16x128xf32, #tpu.memory_space<vmem>>, vector<1x16x128xf32>,
    %225 = vector.extract_strided_slice %9 {offsets = [80, 0], sizes = [16, 384], strides = [1, 1]} : vector<128x384xf32> to vector<16x384xf32>
    %226 = arith.truncf %217 : vector<16x128xf32> to vector<16x128xbf16>
    %cst_47 = arith.constant dense<0.000000e+00> : vector<16x384xf32>
    %227 = tpu.matmul %226, %10, %cst_47 {dimension_numbers = #tpu.dot_dimension_numbers<[1], [0], [0], [1], [0, 0, 1, 1], [], []>} : vector<16x128xbf16>, vector<128x384xbf16>, vector<16x384xf32> -> vector<16x384xf32>
    %228 = vector.extract_strided_slice %225 {offsets = [0, 0], sizes = [16, 128], strides = [1, 1]} : vector<16x384xf32> to vector<16x128xf32>
    %229 = vector.extract_strided_slice %227 {offsets = [0, 0], sizes = [16, 128], strides = [1, 1]} : vector<16x384xf32> to vector<16x128xf32>
    %230 = arith.addf %228, %229 : vector<16x128xf32>
    %231 = arith.negf %230 : vector<16x128xf32>
    %232 = math.exp %231 : vector<16x128xf32>
    %cst_48 = arith.constant 1.000000e+00 : f32
    %233 = vector.broadcast %cst_48 : f32 to vector<16x128xf32>
    %234 = arith.addf %233, %232 : vector<16x128xf32>
    %235 = arith.divf %233, %234 : vector<16x128xf32>
    %236 = vector.extract_strided_slice %225 {offsets = [0, 128], sizes = [16, 128], strides = [1, 1]} : vector<16x384xf32> to vector<16x128xf32>
    %237 = vector.extract_strided_slice %227 {offsets = [0, 128], sizes = [16, 128], strides = [1, 1]} : vector<16x384xf32> to vector<16x128xf32>
    %238 = arith.addf %236, %237 : vector<16x128xf32>
    %239 = arith.negf %238 : vector<16x128xf32>
    %240 = math.exp %239 : vector<16x128xf32>
    %cst_49 = arith.constant 1.000000e+00 : f32
    %241 = vector.broadcast %cst_49 : f32 to vector<16x128xf32>
    %242 = arith.addf %241, %240 : vector<16x128xf32>
    %243 = arith.divf %241, %242 : vector<16x128xf32>
    %244 = vector.extract_strided_slice %225 {offsets = [0, 256], sizes = [16, 128], strides = [1, 1]} : vector<16x384xf32> to vector<16x128xf32>
    %245 = vector.extract_strided_slice %227 {offsets = [0, 256], sizes = [16, 128], strides = [1, 1]} : vector<16x384xf32> to vector<16x128xf32>
    %246 = vector.broadcast %11 : vector<1x128xf32> to vector<16x128xf32>
    %247 = arith.addf %245, %246 : vector<16x128xf32>
    %248 = arith.mulf %235, %247 : vector<16x128xf32>
    %249 = arith.addf %244, %248 : vector<16x128xf32>
    %250 = math.tanh %249 : vector<16x128xf32>
    %251 = arith.subf %217, %250 : vector<16x128xf32>
    %252 = arith.mulf %243, %251 : vector<16x128xf32>
    %253 = arith.addf %250, %252 : vector<16x128xf32>
    %c5_i32 = arith.constant 5 : i32
    %254 = arith.addi %13, %c5_i32 : i32
    %255 = vector.broadcast %254 : i32 to vector<16x1xi32>
    %256 = arith.cmpi sgt, %12, %255 : vector<16x1xi32>
    %257 = vector.shape_cast %256 : vector<16x1xi1> to vector<16x1xi1>
    %258 = vector.broadcast %257 : vector<16x1xi1> to vector<16x128xi1>
    %259 = arith.select %258, %253, %217 : vector<16x128xi1>, vector<16x128xf32>
    %cst_50 = arith.constant 0.000000e+00 : f32
    %260 = vector.shape_cast %256 : vector<16x1xi1> to vector<16x1xi1>
    %261 = vector.broadcast %260 : vector<16x1xi1> to vector<16x128xi1>
    %262 = vector.broadcast %cst_50 : f32 to vector<16x128xf32>
    %263 = arith.select %261, %253, %262 : vector<16x128xi1>, vector<16x128xf32>
    %c5 = arith.constant 5 : index
    %c0_51 = arith.constant 0 : index
    %c0_52 = arith.constant 0 : index
    %264 = vector.load %arg8[%c5, %c0_51, %c0_52] : memref<8x16x128xf32, #tpu.memory_space<vmem>>, vector<1x16x128xf32>
    %265 = vector.shape_cast %264 : vector<1x16x128xf32> to vector<16x128xf32>
    %266 = vector.shape_cast %263 : vector<16x128xf32> to vector<1x16x128xf32>
    tpu.vector_store %arg8[%c5, %c0_51, %c0_52], %266 {strides = array<i32>} : memref<8x16x128xf32, #tpu.memory_space<vmem>>, vector<1x16x128xf32>,
    %267 = vector.extract_strided_slice %9 {offsets = [96, 0], sizes = [16, 384], strides = [1, 1]} : vector<128x384xf32> to vector<16x384xf32>
    %268 = arith.truncf %259 : vector<16x128xf32> to vector<16x128xbf16>
    %cst_53 = arith.constant dense<0.000000e+00> : vector<16x384xf32>
    %269 = tpu.matmul %268, %10, %cst_53 {dimension_numbers = #tpu.dot_dimension_numbers<[1], [0], [0], [1], [0, 0, 1, 1], [], []>} : vector<16x128xbf16>, vector<128x384xbf16>, vector<16x384xf32> -> vector<16x384xf32>
    %270 = vector.extract_strided_slice %267 {offsets = [0, 0], sizes = [16, 128], strides = [1, 1]} : vector<16x384xf32> to vector<16x128xf32>
    %271 = vector.extract_strided_slice %269 {offsets = [0, 0], sizes = [16, 128], strides = [1, 1]} : vector<16x384xf32> to vector<16x128xf32>
    %272 = arith.addf %270, %271 : vector<16x128xf32>
    %273 = arith.negf %272 : vector<16x128xf32>
    %274 = math.exp %273 : vector<16x128xf32>
    %cst_54 = arith.constant 1.000000e+00 : f32
    %275 = vector.broadcast %cst_54 : f32 to vector<16x128xf32>
    %276 = arith.addf %275, %274 : vector<16x128xf32>
    %277 = arith.divf %275, %276 : vector<16x128xf32>
    %278 = vector.extract_strided_slice %267 {offsets = [0, 128], sizes = [16, 128], strides = [1, 1]} : vector<16x384xf32> to vector<16x128xf32>
    %279 = vector.extract_strided_slice %269 {offsets = [0, 128], sizes = [16, 128], strides = [1, 1]} : vector<16x384xf32> to vector<16x128xf32>
    %280 = arith.addf %278, %279 : vector<16x128xf32>
    %281 = arith.negf %280 : vector<16x128xf32>
    %282 = math.exp %281 : vector<16x128xf32>
    %cst_55 = arith.constant 1.000000e+00 : f32
    %283 = vector.broadcast %cst_55 : f32 to vector<16x128xf32>
    %284 = arith.addf %283, %282 : vector<16x128xf32>
    %285 = arith.divf %283, %284 : vector<16x128xf32>
    %286 = vector.extract_strided_slice %267 {offsets = [0, 256], sizes = [16, 128], strides = [1, 1]} : vector<16x384xf32> to vector<16x128xf32>
    %287 = vector.extract_strided_slice %269 {offsets = [0, 256], sizes = [16, 128], strides = [1, 1]} : vector<16x384xf32> to vector<16x128xf32>
    %288 = vector.broadcast %11 : vector<1x128xf32> to vector<16x128xf32>
    %289 = arith.addf %287, %288 : vector<16x128xf32>
    %290 = arith.mulf %277, %289 : vector<16x128xf32>
    %291 = arith.addf %286, %290 : vector<16x128xf32>
    %292 = math.tanh %291 : vector<16x128xf32>
    %293 = arith.subf %259, %292 : vector<16x128xf32>
    %294 = arith.mulf %285, %293 : vector<16x128xf32>
    %295 = arith.addf %292, %294 : vector<16x128xf32>
    %c6_i32 = arith.constant 6 : i32
    %296 = arith.addi %13, %c6_i32 : i32
    %297 = vector.broadcast %296 : i32 to vector<16x1xi32>
    %298 = arith.cmpi sgt, %12, %297 : vector<16x1xi32>
    %299 = vector.shape_cast %298 : vector<16x1xi1> to vector<16x1xi1>
    %300 = vector.broadcast %299 : vector<16x1xi1> to vector<16x128xi1>
    %301 = arith.select %300, %295, %259 : vector<16x128xi1>, vector<16x128xf32>
    %cst_56 = arith.constant 0.000000e+00 : f32
    %302 = vector.shape_cast %298 : vector<16x1xi1> to vector<16x1xi1>
    %303 = vector.broadcast %302 : vector<16x1xi1> to vector<16x128xi1>
    %304 = vector.broadcast %cst_56 : f32 to vector<16x128xf32>
    %305 = arith.select %303, %295, %304 : vector<16x128xi1>, vector<16x128xf32>
    %c6 = arith.constant 6 : index
    %c0_57 = arith.constant 0 : index
    %c0_58 = arith.constant 0 : index
    %306 = vector.load %arg8[%c6, %c0_57, %c0_58] : memref<8x16x128xf32, #tpu.memory_space<vmem>>, vector<1x16x128xf32>
    %307 = vector.shape_cast %306 : vector<1x16x128xf32> to vector<16x128xf32>
    %308 = vector.shape_cast %305 : vector<16x128xf32> to vector<1x16x128xf32>
    tpu.vector_store %arg8[%c6, %c0_57, %c0_58], %308 {strides = array<i32>} : memref<8x16x128xf32, #tpu.memory_space<vmem>>, vector<1x16x128xf32>,
    %309 = vector.extract_strided_slice %9 {offsets = [112, 0], sizes = [16, 384], strides = [1, 1]} : vector<128x384xf32> to vector<16x384xf32>
    %310 = arith.truncf %301 : vector<16x128xf32> to vector<16x128xbf16>
    %cst_59 = arith.constant dense<0.000000e+00> : vector<16x384xf32>
    %311 = tpu.matmul %310, %10, %cst_59 {dimension_numbers = #tpu.dot_dimension_numbers<[1], [0], [0], [1], [0, 0, 1, 1], [], []>} : vector<16x128xbf16>, vector<128x384xbf16>, vector<16x384xf32> -> vector<16x384xf32>
    %312 = vector.extract_strided_slice %309 {offsets = [0, 0], sizes = [16, 128], strides = [1, 1]} : vector<16x384xf32> to vector<16x128xf32>
    %313 = vector.extract_strided_slice %311 {offsets = [0, 0], sizes = [16, 128], strides = [1, 1]} : vector<16x384xf32> to vector<16x128xf32>
    %314 = arith.addf %312, %313 : vector<16x128xf32>
    %315 = arith.negf %314 : vector<16x128xf32>
    %316 = math.exp %315 : vector<16x128xf32>
    %cst_60 = arith.constant 1.000000e+00 : f32
    %317 = vector.broadcast %cst_60 : f32 to vector<16x128xf32>
    %318 = arith.addf %317, %316 : vector<16x128xf32>
    %319 = arith.divf %317, %318 : vector<16x128xf32>
    %320 = vector.extract_strided_slice %309 {offsets = [0, 128], sizes = [16, 128], strides = [1, 1]} : vector<16x384xf32> to vector<16x128xf32>
    %321 = vector.extract_strided_slice %311 {offsets = [0, 128], sizes = [16, 128], strides = [1, 1]} : vector<16x384xf32> to vector<16x128xf32>
    %322 = arith.addf %320, %321 : vector<16x128xf32>
    %323 = arith.negf %322 : vector<16x128xf32>
    %324 = math.exp %323 : vector<16x128xf32>
    %cst_61 = arith.constant 1.000000e+00 : f32
    %325 = vector.broadcast %cst_61 : f32 to vector<16x128xf32>
    %326 = arith.addf %325, %324 : vector<16x128xf32>
    %327 = arith.divf %325, %326 : vector<16x128xf32>
    %328 = vector.extract_strided_slice %309 {offsets = [0, 256], sizes = [16, 128], strides = [1, 1]} : vector<16x384xf32> to vector<16x128xf32>
    %329 = vector.extract_strided_slice %311 {offsets = [0, 256], sizes = [16, 128], strides = [1, 1]} : vector<16x384xf32> to vector<16x128xf32>
    %330 = vector.broadcast %11 : vector<1x128xf32> to vector<16x128xf32>
    %331 = arith.addf %329, %330 : vector<16x128xf32>
    %332 = arith.mulf %319, %331 : vector<16x128xf32>
    %333 = arith.addf %328, %332 : vector<16x128xf32>
    %334 = math.tanh %333 : vector<16x128xf32>
    %335 = arith.subf %301, %334 : vector<16x128xf32>
    %336 = arith.mulf %327, %335 : vector<16x128xf32>
    %337 = arith.addf %334, %336 : vector<16x128xf32>
    %c7_i32 = arith.constant 7 : i32
    %338 = arith.addi %13, %c7_i32 : i32
    %339 = vector.broadcast %338 : i32 to vector<16x1xi32>
    %340 = arith.cmpi sgt, %12, %339 : vector<16x1xi32>
    %341 = vector.shape_cast %340 : vector<16x1xi1> to vector<16x1xi1>
    %342 = vector.broadcast %341 : vector<16x1xi1> to vector<16x128xi1>
    %343 = arith.select %342, %337, %301 : vector<16x128xi1>, vector<16x128xf32>
    %cst_62 = arith.constant 0.000000e+00 : f32
    %344 = vector.shape_cast %340 : vector<16x1xi1> to vector<16x1xi1>
    %345 = vector.broadcast %344 : vector<16x1xi1> to vector<16x128xi1>
    %346 = vector.broadcast %cst_62 : f32 to vector<16x128xf32>
    %347 = arith.select %345, %337, %346 : vector<16x128xi1>, vector<16x128xf32>
    %c7 = arith.constant 7 : index
    %c0_63 = arith.constant 0 : index
    %c0_64 = arith.constant 0 : index
    %348 = vector.load %arg8[%c7, %c0_63, %c0_64] : memref<8x16x128xf32, #tpu.memory_space<vmem>>, vector<1x16x128xf32>
    %349 = vector.shape_cast %348 : vector<1x16x128xf32> to vector<16x128xf32>
    %350 = vector.shape_cast %347 : vector<16x128xf32> to vector<1x16x128xf32>
    tpu.vector_store %arg8[%c7, %c0_63, %c0_64], %350 {strides = array<i32>} : memref<8x16x128xf32, #tpu.memory_space<vmem>>, vector<1x16x128xf32>,
    %c0_65 = arith.constant 0 : index
    %c0_66 = arith.constant 0 : index
    %351 = vector.load %arg10[%c0_65, %c0_66] : memref<16x128xf32, #tpu.memory_space<vmem>>, vector<16x128xf32>
    tpu.vector_store %arg10[%c0_65, %c0_66], %343 {strides = array<i32>} : memref<16x128xf32, #tpu.memory_space<vmem>>, vector<16x128xf32>,
    %c0_i32_67 = arith.constant 0 : i32
    %352 = arith.cmpi eq, %arg1, %c0_i32_67 : i32
    %353 = arith.extui %352 : i1 to i32
    %c0_i32_68 = arith.constant 0 : i32
    %354 = arith.cmpi ne, %353, %c0_i32_68 : i32
    scf.if %354 {
      %c0_69 = arith.constant 0 : index
      %c0_70 = arith.constant 0 : index
      %355 = vector.load %arg9[%c0_69, %c0_70] : memref<16x128xf32, #tpu.memory_space<vmem>>, vector<16x128xf32>
      tpu.vector_store %arg9[%c0_69, %c0_70], %343 {strides = array<i32>} : memref<16x128xf32, #tpu.memory_space<vmem>>, vector<16x128xf32>,
    } else {
    }
    return
  }
  func.func @transform_0(%arg0: i32, %arg1: i32) -> (i32, i32, i32) {
    %c0_i32 = arith.constant 0 : i32
    %c0_i32_0 = arith.constant 0 : i32
    return %arg1, %arg0, %c0_i32 : i32, i32, i32
  }
  func.func @transform_1(%arg0: i32, %arg1: i32) -> (i32, i32) {
    %c0_i32 = arith.constant 0 : i32
    %c0_i32_0 = arith.constant 0 : i32
    return %arg0, %c0_i32 : i32, i32
  }
  func.func @transform_2(%arg0: i32, %arg1: i32) -> (i32, i32) {
    %c0_i32 = arith.constant 0 : i32
    %c0_i32_0 = arith.constant 0 : i32
    %c0_i32_1 = arith.constant 0 : i32
    return %c0_i32, %c0_i32_0 : i32, i32
  }
  func.func @transform_3(%arg0: i32, %arg1: i32) -> (i32, i32) {
    %c0_i32 = arith.constant 0 : i32
    %c0_i32_0 = arith.constant 0 : i32
    %c0_i32_1 = arith.constant 0 : i32
    return %c0_i32, %c0_i32_0 : i32, i32
  }
  func.func @transform_4(%arg0: i32, %arg1: i32) -> (i32, i32) {
    %c0_i32 = arith.constant 0 : i32
    %c0_i32_0 = arith.constant 0 : i32
    %c0_i32_1 = arith.constant 0 : i32
    return %c0_i32, %c0_i32_0 : i32, i32
  }
  func.func @transform_5(%arg0: i32, %arg1: i32) -> (i32, i32) {
    %c0_i32 = arith.constant 0 : i32
    %c0_i32_0 = arith.constant 0 : i32
    %c0_i32_1 = arith.constant 0 : i32
    return %c0_i32, %c0_i32_0 : i32, i32
  }
  func.func @transform_6(%arg0: i32, %arg1: i32) -> (i32, i32, i32) {
    %c0_i32 = arith.constant 0 : i32
    %c0_i32_0 = arith.constant 0 : i32
    return %arg1, %arg0, %c0_i32 : i32, i32, i32
  }
  func.func @transform_7(%arg0: i32, %arg1: i32) -> (i32, i32) {
    %c0_i32 = arith.constant 0 : i32
    %c0_i32_0 = arith.constant 0 : i32
    return %arg0, %c0_i32 : i32, i32
  }
}

</mosaic_0001>

<bundles_post_ra>
// kernel: tpu_custom_call.1
= control target key start
LH: loop header
LB: loop body
LE: loop exit
PB: predicated region body
PF: predicated region fallthrough
CT: control target
= control target key end

     0   :  { %13 = vsyncpa [#allocation4], 0  ;;  %s3509_s0 = inlined_call_operand.hbm [shape: bf16[8,16,128], index: 0, kind: input, shape index: {}]   ;;  %s3510_s1 = inlined_call_operand.vmem [shape: s32[16,1], index: 1, kind: input, shape index: {}]   ;;  %s3511_s2 = inlined_call_operand.hbm [shape: bf16[128,384], index: 2, kind: input, shape index: {}]   ;;  %s3512_s3 = inlined_call_operand.hbm [shape: bf16[128,384], index: 3, kind: input, shape index: {}]   ;;  %s3513_s4 = inlined_call_operand.vmem [shape: f32[1,384], index: 4, kind: input, shape index: {}]   ;;  %s3514_s5 = inlined_call_operand.vmem [shape: f32[1,128], index: 5, kind: input, shape index: {}]   ;;  %s3515_s6 = inlined_call_operand.hbm [shape: f32[8,16,128], index: 6, kind: output, shape index: {0}]   ;;  %s3516_s7 = inlined_call_operand.hbm [shape: f32[16,128], index: 7, kind: output, shape index: {1}]  }
   0x1   :  { %14 = vsyncpa [#allocation7], 0 }
   0x2   :  { %15 = vsyncpa [#allocation5], 0 }
   0x3   :  { %16 = vsyncpa [#allocation11], 0  ;;  %s2752_s24 = smov [#allocation6]   ;;  %s2634_s28 = scalar_lea.hbm %s3511_s2, 3072 }
   0x4   :  { %s36_s25 = sshll.u32 %s2752_s24, 4  ;;  %p2635_p0 = scmp.ne.s32.totalorder %s3511_s2, %s2634_s28  ;;  %s37_s25 = int_to_ptr.vmem [resolvable:$true] %s36_s25 }
   0x5   :  { %p2638_p1 = scmp.lt.u32.totalorder %s2634_s28, %s3511_s2 }
   0x7   :  { %p2640_p2 = pnand %p2638_p1, %p2635_p0 }
   0x9   :  { %2643 = shalt.err (!%p2640_p2)
}
   0xa   :  { %s2644_s10 = scalar_lea.vmem %s37_s25, 3072  ;;  %p2649_p4 = scmp.lt.s32.totalorder %s37_s25, %s37_s25 }
   0xb   :  { %p2645_p3 = scmp.ne.s32.totalorder %s37_s25, %s2644_s10  ;;  %p2650_p5 = scmp.lt.s32.totalorder %s2644_s10, %s2644_s10 }
   0xd   :  { %p2651_p6 = por %p2650_p5, %p2649_p4 }
   0xf   :  { %p2652_p7 = pnand %p2651_p6, %p2645_p3 }
  0x11   :  { %2655 = shalt.err (!%p2652_p7)
}
  0x12   :  { %s2753_s11 = smov 192   ;;  %s2754_s12 = smov 12  }
  0x13   :  { %42 = dma.hbm_to_vmem [thread:$0]  %s3511_s2, 3072, %s37_s25, [#allocation7], %s2753_s11, %s2753_s11, %s2754_s12  }
  0x14   :  { %s2755_s15 = smov [#allocation3]   ;;  %s2656_s19 = scalar_lea.hbm %s3509_s0, 1024 }
  0x15   :  { %s22_s16 = sshll.u32 %s2755_s15, 4  ;;  %p2657_p8 = scmp.ne.s32.totalorder %s3509_s0, %s2656_s19  ;;  %s23_s16 = int_to_ptr.vmem [resolvable:$true] %s22_s16 }
  0x16   :  { %p2660_p9 = scmp.lt.u32.totalorder %s2656_s19, %s3509_s0 }
  0x18   :  { %p2662_p10 = pnand %p2660_p9, %p2657_p8 }
  0x1a   :  { %2665 = shalt.err (!%p2662_p10)
}
  0x1b   :  { %s2666_s24 = scalar_lea.vmem %s23_s16, 1024  ;;  %p2671_p12 = scmp.lt.s32.totalorder %s23_s16, %s23_s16 }
  0x1c   :  { %p2667_p11 = scmp.ne.s32.totalorder %s23_s16, %s2666_s24  ;;  %p2672_p13 = scmp.lt.s32.totalorder %s2666_s24, %s2666_s24 }
  0x1e   :  { %p2673_p0 = por %p2672_p13, %p2671_p12 }
  0x20   :  { %p2674_p1 = pnand %p2673_p0, %p2667_p11 }
  0x22   :  { %2677 = shalt.err (!%p2674_p1)
}
  0x23   :  { %s2756_s2 = smov 64   ;;  %s2757_s25 = smov 4  }
  0x24   :  { %28 = dma.hbm_to_vmem [thread:$0]  %s3509_s0, 1024, %s23_s16, [#allocation4], %s2756_s2, %s2756_s2, %s2757_s25  }
  0x25   :  { %s2758_s28 = smov [#allocation8]   ;;  %s2678_s9 = scalar_lea.hbm %s3512_s3, 3072 }
  0x26   :  { %s48_s29 = sshll.u32 %s2758_s28, 4  ;;  %p2679_p2 = scmp.ne.s32.totalorder %s3512_s3, %s2678_s9  ;;  %s49_s29 = int_to_ptr.vmem [resolvable:$true] %s48_s29 }
  0x27   :  { %p2682_p3 = scmp.lt.u32.totalorder %s2678_s9, %s3512_s3 }
  0x29   :  { %p2684_p4 = pnand %p2682_p3, %p2679_p2 }
  0x2b   :  { %2687 = shalt.err (!%p2684_p4)
}
  0x2c   :  { %s2688_s17 = scalar_lea.vmem %s49_s29, 3072  ;;  %p2693_p6 = scmp.lt.s32.totalorder %s49_s29, %s49_s29 }
  0x2d   :  { %p2689_p5 = scmp.ne.s32.totalorder %s49_s29, %s2688_s17  ;;  %p2694_p7 = scmp.lt.s32.totalorder %s2688_s17, %s2688_s17 }
  0x2f   :  { %p2695_p8 = por %p2694_p7, %p2693_p6 }
  0x31   :  { %p2696_p9 = pnand %p2695_p8, %p2689_p5 }
  0x33   :  { %2699 = shalt.err (!%p2696_p9)
}
  0x34   :  { %54 = dma.hbm_to_vmem [thread:$0]  %s3512_s3, 3072, %s49_s29, [#allocation7], %s2753_s11, %s2753_s11, %s2754_s12  }
  0x35   :  { %2744 = dma.done.wait [#allocation4], 1024  }
  0x36   :  { %2745 = vsyncadd [#allocation4], 4294966272 }
  0x37   :  { %2746 = dma.done.wait [#allocation7], 6144  }
  0x38   :  { %2747 = vsyncadd [#allocation7], 4294961152  ;;  %v3517_v0 = vmov 0   ;;  %v2377_v1 = vld [vmem:[#allocation6 + $0x4] ss:$12 sps:$4 sm:$0xff]   ;;  %v2405_v29 = vld [vmem:[#allocation3 + $0x8] sm:$0xff]  }
  0x39   :  { %348 = vmatprep.mubr.bf16.mxu0 %v3517_v0  ;;  %2375 = vset.pattern.permute.xlu0 %v3517_v0  ;;  %v2379_v2 = vld [vmem:[#allocation6] ss:$12 sps:$4 sm:$0xff]   ;;  %v2380_v3 = vld [vmem:[#allocation6 + $0x1c] ss:$12 sps:$4 sm:$0xff]   ;;  %v2382_v4 = vld [vmem:[#allocation6 + $0x18] ss:$12 sps:$4 sm:$0xff]  }
  0x3a   :  { %2376 = vset.pattern.permute.xlu1 %v3517_v0  ;;  %316 = vmatprep.subr.bf16.mxu0 %v2377_v1  ;;  %v2383_v5 = vld [vmem:[#allocation6 + $0x34] ss:$12 sps:$4 sm:$0xff]   ;;  %v2385_v6 = vld [vmem:[#allocation6 + $0x30] ss:$12 sps:$4 sm:$0xff]   ;;  %v2386_v7 = vld [vmem:[#allocation6 + $0x4c] ss:$12 sps:$4 sm:$0xff]  }
  0x3b   :  { %317 = vmatpush1.bf16.msra.mxu0 %v2379_v2  ;;  %v2388_v8 = vld [vmem:[#allocation6 + $0x48] ss:$12 sps:$4 sm:$0xff]   ;;  %v2401_v9 = vld [vmem:[#allocation3] sm:$0xff]   ;;  %v2397_v17 = vld [vmem:[#allocation6 + $0x90] ss:$12 sps:$4 sm:$0xff]   ;;  %v3519_v46 = vmov 0.0  }
  0x3c   :  { %318 = vmatprep.subr.bf16.mxu0 %v2380_v3  ;;  %v2389_v10 = vld [vmem:[#allocation6 + $0x64] ss:$12 sps:$4 sm:$0xff]   ;;  %2120 = vmatprep.mubr.bf16.mxu1 %v2401_v9  ;;  %v2391_v11 = vld [vmem:[#allocation6 + $0x60] ss:$12 sps:$4 sm:$0xff]   ;;  %v2392_v12 = vld [vmem:[#allocation6 + $0x7c] ss:$12 sps:$4 sm:$0xff]  }
  0x3d   :  { %v2394_v13 = vld [vmem:[#allocation6 + $0x78] ss:$12 sps:$4 sm:$0xff]   ;;  %v2414_v14 = vld [vmem:[#allocation6 + $0x8] ss:$12 sps:$4 sm:$0xff]   ;;  %v2418_v16 = vld [vmem:[#allocation6 + $0x20] ss:$12 sps:$4 sm:$0xff]  }
  0x3e   :  { %v2395_v15 = vld [vmem:[#allocation6 + $0x94] ss:$12 sps:$4 sm:$0xff]   ;;  %2104 = vmatprep.subr.bf16.mxu1 %v2414_v14  ;;  %v2420_v18 = vld [vmem:[#allocation6 + $0x38] ss:$12 sps:$4 sm:$0xff]   ;;  %v2424_v21 = vld [vmem:[#allocation6 + $0x50] ss:$12 sps:$4 sm:$0xff]  }
  0x3f   :  { %319 = vmatpush1.bf16.msra.mxu0 %v2382_v4  ;;  %2105 = vmatpush3.bf16.msra.mxu1 %v2414_v14  ;;  %v2398_v19 = vld [vmem:[#allocation6 + $0xac] ss:$12 sps:$4 sm:$0xff]   ;;  %v2400_v20 = vld [vmem:[#allocation6 + $0xa8] ss:$12 sps:$4 sm:$0xff]   ;;  %v2852_v22 = vld [vmem:[#allocation8 + $0x4] ss:$12 sps:$4 sm:$0xff]  }
  0x40   :  { %320 = vmatprep.subr.bf16.mxu0 %v2383_v5  ;;  %2106 = vmatprep.subr.bf16.mxu1 %v2418_v16  ;;  %v2854_v23 = vld [vmem:[#allocation8] ss:$12 sps:$4 sm:$0xff]   ;;  %v2856_v24 = vld [vmem:[#allocation8 + $0x1c] ss:$12 sps:$4 sm:$0xff]   ;;  %v2859_v26 = vld [vmem:[#allocation8 + $0x18] ss:$12 sps:$4 sm:$0xff]  }
  0x41   :  { %v2426_v25 = vld [vmem:[#allocation6 + $0x68] ss:$12 sps:$4 sm:$0xff]   ;;  %v2430_v27 = vld [vmem:[#allocation6 + $0x80] ss:$12 sps:$4 sm:$0xff]   ;;  %v2866_v30 = vld [vmem:[#allocation8 + $0x30] ss:$12 sps:$4 sm:$0xff]  }
  0x42   :  { %v2864_v28 = vld [vmem:[#allocation8 + $0x34] ss:$12 sps:$4 sm:$0xff]   ;;  %v2869_v31 = vld [vmem:[#allocation8 + $0x4c] ss:$12 sps:$4 sm:$0xff]   ;;  %v2436_v34 = vld [vmem:[#allocation6 + $0xb0] ss:$12 sps:$4 sm:$0xff]  }
  0x43   :  { %321 = vmatpush1.bf16.msra.mxu0 %v2385_v6  ;;  %2107 = vmatpush3.bf16.msra.mxu1 %v2418_v16  ;;  %v2432_v32 = vld [vmem:[#allocation6 + $0x98] ss:$12 sps:$4 sm:$0xff]   ;;  %v2872_v33 = vld [vmem:[#allocation8 + $0x48] ss:$12 sps:$4 sm:$0xff]   ;;  %v2891_v39 = vld [vmem:[#allocation8 + $0x60] ss:$12 sps:$4 sm:$0xff]  }
  0x44   :  { %322 = vmatprep.subr.bf16.mxu0 %v2386_v7  ;;  %2108 = vmatprep.subr.bf16.mxu1 %v2420_v18  ;;  %v2877_v35 = vld [vmem:[#allocation8 + $0x64] ss:$12 sps:$4 sm:$0xff]   ;;  %v2887_v37 = vld [vmem:[%s3510_s1 + $0x8] sm:$0xff]  ;;  %v2907_v45 = vld [vmem:[#allocation8 + $0x94] ss:$12 sps:$4 sm:$0xff]   ;;  %vm2761_vm8 = vmmov 0  }
  0x45   :  { %v2882_v36 = vld [vmem:[%s3510_s1] sm:$0xff]  ;;  %v2409_v38 = vld [vmem:[#allocation3 + $0x10] sm:$0xff]   ;;  %vm827_vm1 = vcmp.gt.s32.totalorder %v2887_v37, 0  ;;  %v2896_v41 = vld [vmem:[#allocation8 + $0x7c] ss:$12 sps:$4 sm:$0xff]   ;;  %v2762_v5 = vmov 0.0|0.0  }
  0x46   :  { %vm826_vm0 = vcmp.gt.s32.totalorder %v2882_v36, 0  ;;  %v2898_v42 = vld [vmem:[#allocation8 + $0x8] ss:$12 sps:$4 sm:$0xff]   ;;  %v829_v43 = vsel %vm827_vm1, 1, %v3517_v0  ;;  %v2903_v44 = vld [vmem:[#allocation8 + $0x78] ss:$12 sps:$4 sm:$0xff]  }
  0x47   :  { %323 = vmatpush1.bf16.msra.mxu0 %v2388_v8  ;;  %2109 = vmatpush3.bf16.msra.mxu1 %v2420_v18  ;;  %v828_v40 = vsel %vm826_vm0, 1, %v3517_v0  ;;  %vm1121_vm2 = vcmp.gt.s32.totalorder %v2882_v36, 2  ;;  %v2413_v47 = vld [vmem:[#allocation3 + $0x18] sm:$0xff]   ;;  %v2911_v48 = vld [vmem:[#allocation8 + $0x20] ss:$12 sps:$4 sm:$0xff]   ;;  %vm1269_vm3 = vcmp.gt.s32.totalorder %v2882_v36, 3 }
  0x48   :  { %324 = vmatprep.subr.bf16.mxu0 %v2389_v10  ;;  %2110 = vmatprep.subr.bf16.mxu1 %v2424_v21  ;;  %v1123_v49 = vsel %vm1121_vm2, 1, %v3517_v0  ;;  %v2915_v50 = vld [vmem:[#allocation8 + $0x90] ss:$12 sps:$4 sm:$0xff]   ;;  %v2920_v51 = vld [vmem:[#allocation8 + $0xac] ss:$12 sps:$4 sm:$0xff]   ;;  %v1271_v53 = vsel %vm1269_vm3, 1, %v3517_v0  ;;  %v125_v10 = vlaneseq }
  0x49   :  { %831 = vperm.xlu0 %2375, %v828_v40   ;;  %v2923_v52 = vld [vmem:[#allocation8 + $0x38] ss:$12 sps:$4 sm:$0xff]   ;;  %v2928_v54 = vld [vmem:[#allocation8 + $0xa8] ss:$12 sps:$4 sm:$0xff]   ;;  %vm1417_vm4 = vcmp.gt.s32.totalorder %v2882_v36, 4  ;;  %vm1565_vm5 = vcmp.gt.s32.totalorder %v2882_v36, 5 }
  0x4a   :  { %v2419_v55 = vld [vmem:[#allocation3 + $0x20] sm:$0xff]   ;;  %v2934_v56 = vld [vmem:[#allocation8 + $0x50] ss:$12 sps:$4 sm:$0xff]   ;;  %v1419_v57 = vsel %vm1417_vm4, 1, %v3517_v0  ;;  %v2942_v58 = vld [vmem:[#allocation8 + $0x68] ss:$12 sps:$4 sm:$0xff]  }
  0x4b   :  { %325 = vmatpush1.bf16.msra.mxu0 %v2391_v11  ;;  %2111 = vmatpush3.bf16.msra.mxu1 %v2424_v21  ;;  %v1567_v59 = vsel %vm1565_vm5, 1, %v3517_v0  ;;  %v2425_v60 = vld [vmem:[#allocation3 + $0x28] sm:$0xff]   ;;  %vm1713_vm6 = vcmp.gt.s32.totalorder %v2882_v36, 6  ;;  %v2431_v61 = vld [vmem:[#allocation3 + $0x30] sm:$0xff]   ;;  %vm1861_vm7 = vcmp.gt.s32.totalorder %v2882_v36, 7  ;;  %v2437_v3 = vld [vmem:[#allocation3 + $0x38] sm:$0xff]  }
  0x4c   :  { %326 = vmatprep.subr.bf16.mxu0 %v2392_v12  ;;  %2112 = vmatprep.subr.bf16.mxu1 %v2426_v25  ;;  %v2949_v62 = vld [vmem:[#allocation8 + $0x80] ss:$12 sps:$4 sm:$0xff]   ;;  %v1715_v63 = vsel %vm1713_vm6, 1, %v3517_v0  ;;  %v2955_v1 = vld [vmem:[#allocation8 + $0x98] ss:$12 sps:$4 sm:$0xff]   ;;  %v1863_v2 = vsel %vm1861_vm7, 1, %v3517_v0 }
  0x4d   :  { %834 = vperm.xlu0 %2375, %v829_v43   ;;  %v2961_v4 = vld [vmem:[#allocation8 + $0xb0] ss:$12 sps:$4 sm:$0xff]   ;;  %vm973_vm9 = vcmp.gt.s32.totalorder %v2882_v36, 1  ;;  %vm974_vm10 = vcmp.gt.s32.totalorder %v2887_v37, 1  ;;  %vm1122_vm11 = vcmp.gt.s32.totalorder %v2887_v37, 2  ;;  %vm1270_vm12 = vcmp.gt.s32.totalorder %v2887_v37, 3 }
  0x4e   :  { %v975_v6 = vsel %vm973_vm9, 1, %v3517_v0  ;;  %v976_v7 = vsel %vm974_vm10, 1, %v3517_v0  ;;  %v1124_v8 = vsel %vm1122_vm11, 1, %v3517_v0  ;;  %vm1418_vm13 = vcmp.gt.s32.totalorder %v2887_v37, 4  ;;  %s2764_s24 = smov [#allocation10]  }
  0x4f   :  { %327 = vmatpush1.bf16.msra.mxu0 %v2394_v13  ;;  %2113 = vmatpush3.bf16.msra.mxu1 %v2426_v25  ;;  %v1420_v11 = vsel %vm1418_vm13, 1, %v3517_v0  ;;  %vm1566_vm14 = vcmp.gt.s32.totalorder %v2887_v37, 5  ;;  %v126_v12 = vshrl.u32 %v125_v10, 7  ;;  %vm1714_vm15 = vcmp.gt.s32.totalorder %v2887_v37, 6  ;;  %s1904_s2 = sshll.u32 %s2764_s24, 4  ;;  %s3478_s2 = int_to_ptr.vmem [resolvable:$true] %s1904_s2 }
  0x50   :  { %328 = vmatprep.subr.bf16.mxu0 %v2395_v15  ;;  %2114 = vmatprep.subr.bf16.mxu1 %v2430_v27  ;;  %v1568_v13 = vsel %vm1566_vm14, 1, %v3517_v0  ;;  %v123_v15 = vld [vmem:[%s3513_s4] sm:$0x7]  ;;  %v1716_v16 = vsel %vm1714_vm15, 1, %v3517_v0  ;;  %vm1862_vm0 = vcmp.gt.s32.totalorder %v2887_v37, 7 }
  0x51   :  { %1126 = vperm.xlu0 %2375, %v1123_v49   ;;  %978 = vperm.xlu1 %2376, %v975_v6   ;;  %v135_v14 = vsub.s32 2, %v126_v12  ;;  %v1864_v18 = vsel %vm1862_vm0, 1, %v3517_v0 }
  0x53   :  { %329 = vmatpush1.bf16.msra.mxu0 %v2397_v17  ;;  %2115 = vmatpush3.bf16.msra.mxu1 %v2430_v27  ;;  %v3023_v17 = vrot.slane %v123_v15, %v135_v14 }
  0x54   :  { %330 = vmatprep.subr.bf16.mxu0 %v2398_v19  ;;  %2116 = vmatprep.subr.bf16.mxu1 %v2432_v32 }
  0x55   :  { %1274 = vperm.xlu0 %2375, %v1271_v53   ;;  %981 = vperm.xlu1 %2376, %v976_v7  }
  0x57   :  { %331 = vmatpush1.bf16.msra.mxu0 %v2400_v20  ;;  %2117 = vmatpush3.bf16.msra.mxu1 %v2432_v32 }
  0x58   :  { %693 = vmatprep.subr.bf16.mxu0 %v2852_v22  ;;  %2118 = vmatprep.subr.bf16.mxu1 %v2436_v34 }
  0x59   :  { %1422 = vperm.xlu0 %2375, %v1419_v57   ;;  %1129 = vperm.xlu1 %2376, %v1124_v8  }
  0x5a   :  { %349 = vmatmul.mubr.bf16.vlgmr.msra.gmra.mrb[0].mxu0 %v2401_v9  ;;  %v1272_v9 = vsel %vm1270_vm12, 1, %v3517_v0 }
  0x5b   :  { %694 = vmatpush1.bf16.msra.mxu0 %v2854_v23  ;;  %358 = vmatprep.mubr.bf16.mxu0 %v3517_v0 }
  0x5c   :  { %695 = vmatprep.subr.bf16.mxu0 %v2856_v24  ;;  %2119 = vmatpush3.bf16.msra.mxu1 %v2436_v34 }
  0x5d   :  { %2136 = vmatprep.subr.bf16.mxu1 %v3519_v46  ;;  %1570 = vperm.xlu0 %2375, %v1567_v59  }
  0x5e   :  { %1277 = vperm.xlu1 %2376, %v1272_v9  }
  0x5f   :  { %696 = vmatpush1.bf16.msra.mxu0 %v2859_v26  ;;  %2121 = vmatmul.mubr.bf16.vlgmr.msra.gmra.mrb[0].mxu1 %v2405_v29 }
  0x60   :  { %697 = vmatprep.subr.bf16.mxu0 %v2864_v28  ;;  %2137 = vmatpush3.bf16.msra.mxu1 %v2898_v42 }
  0x61   :  { %2124 = vmatprep.mubr.bf16.mxu1 %v2409_v38  ;;  %2138 = vmatprep.subr.bf16.mxu1 %v3519_v46 }
  0x62   :  { %359 = vmatmul.mubr.bf16.gmra.mrb[4].mxu0 %v2405_v29  ;;  %1718 = vperm.xlu0 %2375, %v1715_v63  }
  0x63   :  { %368 = vmatprep.mubr.bf16.mxu0 %v3517_v0  ;;  %698 = vmatpush1.bf16.msra.mxu0 %v2866_v30 }
  0x64   :  { %699 = vmatprep.subr.bf16.mxu0 %v2869_v31  ;;  %2139 = vmatpush3.bf16.msra.mxu1 %v2911_v48 }
  0x65   :  { %2140 = vmatprep.subr.bf16.mxu1 %v3519_v46  ;;  %1425 = vperm.xlu1 %2376, %v1420_v11  }
  0x66   :  { %1866 = vperm.xlu0 %2375, %v1863_v2  }
  0x67   :  { %700 = vmatpush1.bf16.msra.mxu0 %v2872_v33  ;;  %2125 = vmatmul.mubr.bf16.gmra.mrb[4].mxu1 %v2413_v47 }
  0x68   :  { %701 = vmatprep.subr.bf16.mxu0 %v2877_v35  ;;  %2141 = vmatpush3.bf16.msra.mxu1 %v2923_v52 }
  0x69   :  { %2128 = vmatprep.mubr.bf16.mxu1 %v2419_v55  ;;  %2142 = vmatprep.subr.bf16.mxu1 %v3519_v46 }
  0x6a   :  { %369 = vmatmul.mubr.bf16.gmra.mrb[8].mxu0 %v2409_v38  ;;  %1573 = vperm.xlu1 %2376, %v1568_v13  }
  0x6b   :  { %378 = vmatprep.mubr.bf16.mxu0 %v3517_v0  ;;  %702 = vmatpush1.bf16.msra.mxu0 %v2891_v39 }
  0x6c   :  { %703 = vmatprep.subr.bf16.mxu0 %v2896_v41  ;;  %2143 = vmatpush3.bf16.msra.mxu1 %v2934_v56 }
  0x6d   :  { %2144 = vmatprep.subr.bf16.mxu1 %v3519_v46 }
  0x6e   :  { %1721 = vperm.xlu1 %2376, %v1716_v16  }
  0x6f   :  { %704 = vmatpush1.bf16.msra.mxu0 %v2903_v44  ;;  %2129 = vmatmul.mubr.bf16.gmra.mrb[8].mxu1 %v2425_v60 }
  0x70   :  { %705 = vmatprep.subr.bf16.mxu0 %v2907_v45  ;;  %2145 = vmatpush3.bf16.msra.mxu1 %v2942_v58 }
  0x71   :  { %2132 = vmatprep.mubr.bf16.mxu1 %v2431_v61  ;;  %2146 = vmatprep.subr.bf16.mxu1 %v3519_v46 }
  0x72   :  { %379 = vmatmul.mubr.bf16.gmra.mrb[12].mxu0 %v2413_v47  ;;  %1869 = vperm.xlu1 %2376, %v1864_v18   ;;  %v127_v18 = vsub.s32 0, %v126_v12 }
  0x73   :  { %388 = vmatprep.mubr.bf16.mxu0 %v3517_v0  ;;  %706 = vmatpush1.bf16.msra.mxu0 %v2915_v50 }
  0x74   :  { %707 = vmatprep.subr.bf16.mxu0 %v2920_v51  ;;  %2147 = vmatpush3.bf16.msra.mxu1 %v2949_v62 }
  0x75   :  { %2148 = vmatprep.subr.bf16.mxu1 %v3519_v46 }
  0x77   :  { %708 = vmatpush1.bf16.msra.mxu0 %v2928_v54  ;;  %2133 = vmatmul.mubr.bf16.gmra.mrb[12].mxu1 %v2437_v3 }
  0x78   :  { %845 = vmatprep.subr.bf16.mxu0 %v2852_v22  ;;  %2149 = vmatpush3.bf16.msra.mxu1 %v2955_v1 }
  0x79   :  { %2152 = vmatprep.mubr.msk.bf16.mxu1 %vm2761_vm8, %v3519_v46  ;;  %2150 = vmatprep.subr.bf16.mxu1 %v3519_v46 }
  0x7a   :  { %389 = vmatmul.mubr.bf16.gmra.mrb[16].mxu0 %v2419_v55 }
  0x7b   :  { %398 = vmatprep.mubr.bf16.mxu0 %v3517_v0 }
  0x7c   :  { %2151 = vmatpush3.bf16.msra.mxu1 %v2961_v4 }
  0x7d   :  { %2156 = vmatprep.subr.bf16.mxu1 %v3519_v46 }
  0x7f   :  { %2153 = vmatmul.mubr.bf16.vlgmr.msra.gmra.mrb[16].mxu1 %v2762_v5 }
  0x80   :  { %2157 = vmatpush3.bf16.msra.mxu1 %v2898_v42  ;;  %2172 = vmatprep.mubr.msk.bf16.mxu1 %vm2761_vm8, %v3519_v46 }
  0x81   :  { %2158 = vmatprep.subr.bf16.mxu1 %v3519_v46 }
  0x82   :  { %399 = vmatmul.mubr.bf16.gmra.mrb[20].mxu0 %v2425_v60 }
  0x83   :  { %408 = vmatprep.mubr.bf16.mxu0 %v3517_v0 }
  0x84   :  { %2159 = vmatpush3.bf16.msra.mxu1 %v2911_v48 }
  0x85   :  { %2160 = vmatprep.subr.bf16.mxu1 %v3519_v46 }
  0x88   :  { %2161 = vmatpush3.bf16.msra.mxu1 %v2923_v52 }
  0x89   :  { %2162 = vmatprep.subr.bf16.mxu1 %v3519_v46 }
  0x8a   :  { %409 = vmatmul.mubr.bf16.gmra.mrb[24].mxu0 %v2431_v61 }
  0x8b   :  { %418 = vmatprep.mubr.bf16.mxu0 %v3517_v0 }
  0x8c   :  { %2163 = vmatpush3.bf16.msra.mxu1 %v2934_v56 }
  0x8d   :  { %2164 = vmatprep.subr.bf16.mxu1 %v3519_v46 }
  0x90   :  { %2165 = vmatpush3.bf16.msra.mxu1 %v2942_v58 }
  0x91   :  { %2166 = vmatprep.subr.bf16.mxu1 %v3519_v46 }
  0x92   :  { %419 = vmatmul.mubr.bf16.gmra.mrb[28].mxu0 %v2437_v3 }
  0x93   :  { %725 = vmatprep.mubr.bf16.mxu0 %v3517_v0 }
  0x94   :  { %2167 = vmatpush3.bf16.msra.mxu1 %v2949_v62 }
  0x95   :  { %2168 = vmatprep.subr.bf16.mxu1 %v3519_v46 }
  0x98   :  { %2169 = vmatpush3.bf16.msra.mxu1 %v2955_v1 }
  0x99   :  { %2170 = vmatprep.subr.bf16.mxu1 %v3519_v46 }
  0x9a   :  { %726 = vmatmul.mubr.bf16.vlgmr.msra.gmra.mrb[0].mxu0 %v2762_v5 }
  0x9b   :  { %846 = vmatpush1.bf16.msra.mxu0 %v2854_v23  ;;  %877 = vmatprep.mubr.bf16.mxu0 %v3517_v0 }
  0x9c   :  { %847 = vmatprep.subr.bf16.mxu0 %v2856_v24  ;;  %2171 = vmatpush3.bf16.msra.mxu1 %v2961_v4 }
  0x9d   :  { %2176 = vmatprep.subr.bf16.mxu1 %v3519_v46 }
  0x9f   :  { %848 = vmatpush1.bf16.msra.mxu0 %v2859_v26 }
  0xa0   :  { %849 = vmatprep.subr.bf16.mxu0 %v2864_v28 }
  0xa3   :  { %850 = vmatpush1.bf16.msra.mxu0 %v2866_v30 }
  0xa4   :  { %851 = vmatprep.subr.bf16.mxu0 %v2869_v31 }
  0xa7   :  { %852 = vmatpush1.bf16.msra.mxu0 %v2872_v33 }
  0xa8   :  { %853 = vmatprep.subr.bf16.mxu0 %v2877_v35 }
  0xab   :  { %854 = vmatpush1.bf16.msra.mxu0 %v2891_v39 }
  0xac   :  { %855 = vmatprep.subr.bf16.mxu0 %v2896_v41 }
  0xaf   :  { %856 = vmatpush1.bf16.msra.mxu0 %v2903_v44 }
  0xb0   :  { %857 = vmatprep.subr.bf16.mxu0 %v2907_v45 }
  0xb3   :  { %858 = vmatpush1.bf16.msra.mxu0 %v2915_v50 }
  0xb4   :  { %859 = vmatprep.subr.bf16.mxu0 %v2920_v51 }
  0xb7   :  { %860 = vmatpush1.bf16.msra.mxu0 %v2928_v54 }
  0xb8   :  { %993 = vmatprep.subr.bf16.mxu0 %v2852_v22 }
 0x132   :  { %v2122_v19 = vpop.f32.mrb[0].mxu1 }
 0x133   :  { %v3027_v20 = vadd.f32 %v2122_v19, %v3023_v17  ;;  %v3029_v21 = vpop.f32.mrb[1].mxu1  ;;  %v3072_v19 = vrot.slane %v123_v15, %v127_v18 }
 0x134   :  { %v2123_v25 = vpop.f32.mrb[2].mxu1 }
 0x135   :  { %v3032_v27 = vadd.f32 %v2123_v25, %v3023_v17  ;;  %v3034_v29 = vpop.f32.mrb[3].mxu1 }
 0x13a   :  { %v2126_v32 = vpop.f32.mrb[4].mxu1 }
 0x13b   :  { %v3037_v34 = vadd.f32 %v2126_v32, %v3023_v17  ;;  %v479_v36 = vpop.f32.mrb[5].mxu1 }
 0x13c   :  { %v3040_v37 = vadd.f32 %v479_v36, %v3023_v17  ;;  %v2127_v38 = vpop.f32.mrb[6].mxu1  ;;  %v131_v36 = vsub.s32 1, %v126_v12 }
 0x13d   :  { %v3043_v40 = vadd.f32 %v2127_v38, %v3023_v17  ;;  %v482_v43 = vpop.f32.mrb[7].mxu1 }
 0x13e   :  { %v3046_v47 = vadd.f32 %v482_v43, %v3023_v17 }
 0x142   :  { %v2130_v49 = vpop.f32.mrb[8].mxu1 }
 0x143   :  { %v3049_v53 = vadd.f32 %v2130_v49, %v3023_v17  ;;  %v495_v55 = vpop.f32.mrb[9].mxu1 }
 0x144   :  { %v3052_v57 = vadd.f32 %v495_v55, %v3023_v17  ;;  %v2131_v59 = vpop.f32.mrb[10].mxu1 }
 0x145   :  { %v3055_v60 = vadd.f32 %v2131_v59, %v3023_v17  ;;  %v498_v61 = vpop.f32.mrb[11].mxu1 }
 0x146   :  { %v3058_v63 = vadd.f32 %v498_v61, %v3023_v17  ;;  %v3076_v61 = vrot.slane %v123_v15, %v131_v36  ;;  %v3083_v15 = vld [vmem:[%s3514_s5] ss:$0 sm:$0xff] }
 0x14a   :  { %v2134_v2 = vpop.f32.mrb[12].mxu1 }
 0x14b   :  { %v3061_v3 = vadd.f32 %v2134_v2, %v3023_v17  ;;  %v511_v5 = vpop.f32.mrb[13].mxu1 }
 0x14c   :  { %v3064_v6 = vadd.f32 %v511_v5, %v3023_v17  ;;  %v2135_v7 = vpop.f32.mrb[14].mxu1 }
 0x14d   :  { %v3067_v8 = vadd.f32 %v2135_v7, %v3023_v17  ;;  %v514_v9 = vpop.f32.mrb[15].mxu1 }
 0x14e   :  { %v3070_v10 = vadd.f32 %v514_v9, %v3023_v17 }
 0x152   :  { %v770_v11 = vpop.f32.mrb[16].mxu1 }
 0x153   :  { %v2154_v13 = vpop.f32.mrb[17].mxu1 }
 0x154   :  { %v773_v14 = vpop.f32.mrb[18].mxu1 }
 0x155   :  { %v2155_v16 = vpop.f32.mrb[19].mxu1 }
 0x16d   :  { %v727_v25 = vpop.f32.mrb[0].mxu0 }
 0x16e   :  { %v2296_v32 = vadd.f32 %v727_v25, %v3072_v19  ;;  %v729_v38 = vpop.f32.mrb[1].mxu0 }
 0x16f   :  { %v731_v43 = vpop.f32.mrb[2].mxu0  ;;  %v2297_v5 = vadd.f32 %v729_v38, %v3076_v61 }
 0x170   :  { %v1977_v49 = vmul.f32 -1.442695, %v2296_v32  ;;  %v2298_v55 = vadd.f32 %v731_v43, %v3072_v19  ;;  %v733_v59 = vpop.f32.mrb[3].mxu0  ;;  %v811_v32 = vadd.f32 %v3083_v15, %v770_v11 }
 0x171   :  { %v2299_v7 = vadd.f32 %v733_v59, %v3076_v61  ;;  %v1979_v9 = vmul.f32 -1.442695, %v2297_v5  ;;  %v812_v59 = vadd.f32 %v3083_v15, %v773_v14 }
 0x172   :  { %2449 = vpow2.f32 %v1977_v49  ;;  %v1978_v2 = vmul.f32 -1.442695, %v2298_v55  ;;  %v464_v49 = vadd.f32 %v3029_v21, %v3023_v17 }
 0x173   :  { %v1980_v16 = vmul.f32 -1.442695, %v2299_v7  ;;  %v467_v7 = vadd.f32 %v3034_v29, %v3023_v17 }
 0x174   :  { %2451 = vpow2.f32 %v1978_v2 }
 0x175   :  { %2453 = vpow2.f32 %v1979_v9 }
 0x17c   :  { %v2450_v13 = vpop.eup %2449 }
 0x17d   :  { %v785_v18 = vadd.f32 1.0, %v2450_v13 }
 0x17e   :  { %v2452_v12 = vpop.eup %2451 }
 0x17f   :  { %2455 = vrcp.f32 %v785_v18  ;;  %v786_v25 = vadd.f32 1.0, %v2452_v12  ;;  %v2454_v36 = vpop.eup %2453  ;;  %v832_v12 = vpop.permute.xlu0 %831 }
 0x180   :  { %2457 = vpow2.f32 %v1980_v16  ;;  %v799_v5 = vadd.f32 1.0, %v2454_v36  ;;  %vm836_vm1 = vcmp.eq.s32.totalorder %v832_v12, 1 }
 0x181   :  { %2459 = vrcp.f32 %v786_v25 }
 0x183   :  { %v835_v17 = vpop.permute.xlu0 %834 }
 0x184   :  { %vm837_vm2 = vcmp.eq.s32.totalorder %v835_v17, 1 }
 0x185   :  { %vm2010_vm3 = vmpackc.low %vm837_vm2, %vm836_vm1 }
 0x189   :  { %v2456_v38 = vpop.eup %2455 }
 0x18a   :  { %v2458_v43 = vpop.eup %2457  ;;  %v813_v55 = vmul.f32 %v2456_v38, %v811_v32 }
 0x18b   :  { %v2460_v2 = vpop.eup %2459  ;;  %v800_v16 = vadd.f32 1.0, %v2458_v43 }
 0x18c   :  { %v815_v9 = vadd.f32 %v813_v55, %v464_v49  ;;  %v814_v13 = vmul.f32 %v2460_v2, %v812_v59  ;;  %v3522_v59 = vmov 0  }
 0x18e   :  { %2461 = vtanh.f32 %v815_v9  ;;  %v816_v18 = vadd.f32 %v814_v13, %v467_v7 }
 0x18f   :  { %2463 = vrcp.f32 %v799_v5 }
 0x190   :  { %2465 = vtanh.f32 %v816_v18 }
 0x191   :  { %2467 = vrcp.f32 %v800_v16 }
 0x198   :  { %v2462_v11 = vpop.eup %2461 }
 0x199   :  { %v2464_v25 = vpop.eup %2463  ;;  %v819_v21 = vsub.f32 0.0, %v2462_v11 }
 0x19a   :  { %v2466_v32 = vpop.eup %2465 }
 0x19b   :  { %v820_v38 = vsub.f32 0.0, %v2466_v32  ;;  %v821_v14 = vmul.f32 %v2464_v25, %v819_v21  ;;  %v2468_v0 = vpop.eup %2467 }
 0x19d   :  { %v822_v36 = vmul.f32 %v2468_v0, %v820_v38  ;;  %v823_v46 = vadd.f32 %v2462_v11, %v821_v14  ;;  %v3521_v0 = vmov 0.0  }
 0x19f   :  { %v824_v29 = vadd.f32 %v2466_v32, %v822_v36  ;;  %v3091_v43 = vsel %vm836_vm1, %v823_v46, 0.0 }
 0x1a0   :  { %842 = vst [vmem:[#allocation9] sm:$0xff] %v3091_v43 }
 0x1a1   :  { %v2011_v49 = vpack.c.bf16 %v824_v29, %v823_v46  ;;  %v3094_v55 = vsel %vm837_vm2, %v824_v29, 0.0 }
 0x1a2   :  { %843 = vst [vmem:[#allocation9 + $0x8] sm:$0xff] %v3094_v55 }
 0x1a3   :  { %2012 = vmatmul.mubr.msk.bf16.vlgmr.msra.gmra.mrb[4].mxu0 %vm2010_vm3, %v2011_v49  ;;  %2173 = vmatmul.mubr.msk.bf16.vlgmr.msra.gmra.mrb[20].mxu1 %vm2010_vm3, %v2011_v49 }
 0x1a4   :  { %994 = vmatpush1.bf16.msra.mxu0 %v2854_v23  ;;  %2177 = vmatpush3.bf16.msra.mxu1 %v2898_v42 }
 0x1a5   :  { %995 = vmatprep.subr.bf16.mxu0 %v2856_v24  ;;  %2178 = vmatprep.subr.bf16.mxu1 %v3521_v0 }
 0x1a6   :  { %1025 = vmatprep.mubr.bf16.mxu0 %v3522_v59  ;;  %2192 = vmatprep.mubr.msk.bf16.mxu1 %vm2761_vm8, %v3521_v0 }
 0x1a8   :  { %996 = vmatpush1.bf16.msra.mxu0 %v2859_v26  ;;  %2179 = vmatpush3.bf16.msra.mxu1 %v2911_v48 }
 0x1a9   :  { %997 = vmatprep.subr.bf16.mxu0 %v2864_v28  ;;  %2180 = vmatprep.subr.bf16.mxu1 %v3521_v0 }
 0x1ac   :  { %998 = vmatpush1.bf16.msra.mxu0 %v2866_v30  ;;  %2181 = vmatpush3.bf16.msra.mxu1 %v2923_v52 }
 0x1ad   :  { %999 = vmatprep.subr.bf16.mxu0 %v2869_v31  ;;  %2182 = vmatprep.subr.bf16.mxu1 %v3521_v0 }
 0x1b0   :  { %1000 = vmatpush1.bf16.msra.mxu0 %v2872_v33  ;;  %2183 = vmatpush3.bf16.msra.mxu1 %v2934_v56 }
 0x1b1   :  { %1001 = vmatprep.subr.bf16.mxu0 %v2877_v35  ;;  %2184 = vmatprep.subr.bf16.mxu1 %v3521_v0 }
 0x1b4   :  { %1002 = vmatpush1.bf16.msra.mxu0 %v2891_v39  ;;  %2185 = vmatpush3.bf16.msra.mxu1 %v2942_v58 }
 0x1b5   :  { %1003 = vmatprep.subr.bf16.mxu0 %v2896_v41  ;;  %2186 = vmatprep.subr.bf16.mxu1 %v3521_v0 }
 0x1b8   :  { %1004 = vmatpush1.bf16.msra.mxu0 %v2903_v44  ;;  %2187 = vmatpush3.bf16.msra.mxu1 %v2949_v62 }
 0x1b9   :  { %1005 = vmatprep.subr.bf16.mxu0 %v2907_v45  ;;  %2188 = vmatprep.subr.bf16.mxu1 %v3521_v0 }
 0x1bc   :  { %1006 = vmatpush1.bf16.msra.mxu0 %v2915_v50  ;;  %2189 = vmatpush3.bf16.msra.mxu1 %v2955_v1 }
 0x1bd   :  { %1007 = vmatprep.subr.bf16.mxu0 %v2920_v51  ;;  %2190 = vmatprep.subr.bf16.mxu1 %v3521_v0 }
 0x1c0   :  { %1008 = vmatpush1.bf16.msra.mxu0 %v2928_v54  ;;  %2191 = vmatpush3.bf16.msra.mxu1 %v2961_v4 }
 0x1c1   :  { %1141 = vmatprep.subr.bf16.mxu0 %v2852_v22  ;;  %2196 = vmatprep.subr.bf16.mxu1 %v3521_v0 }
 0x276   :  { %v879_v46 = vpop.f32.mrb[4].mxu0  ;;  %v922_v2 = vpop.f32.mrb[20].mxu1 }
 0x277   :  { %v2300_v5 = vadd.f32 %v879_v46, %v3072_v19  ;;  %v881_v7 = vpop.f32.mrb[5].mxu0  ;;  %v2174_v9 = vpop.f32.mrb[21].mxu1 }
 0x278   :  { %v883_v13 = vpop.f32.mrb[6].mxu0  ;;  %v925_v16 = vpop.f32.mrb[22].mxu1  ;;  %v2301_v32 = vadd.f32 %v881_v7, %v3076_v61  ;;  %v957_v9 = vadd.f32 %v3083_v15, %v922_v2 }
 0x279   :  { %v1982_v18 = vmul.f32 -1.442695, %v2300_v5  ;;  %v2302_v11 = vadd.f32 %v883_v13, %v3072_v19  ;;  %v885_v12 = vpop.f32.mrb[7].mxu0  ;;  %v2175_v25 = vpop.f32.mrb[23].mxu1  ;;  %v958_v7 = vadd.f32 %v3083_v15, %v925_v16 }
 0x27a   :  { %v2303_v38 = vadd.f32 %v885_v12, %v3076_v61  ;;  %v1984_v14 = vmul.f32 -1.442695, %v2301_v32  ;;  %v979_v2 = vpop.permute.xlu1 %978 }
 0x27b   :  { %2469 = vpow2.f32 %v1982_v18  ;;  %v1983_v21 = vmul.f32 -1.442695, %v2302_v11  ;;  %vm983_vm4 = vcmp.eq.s32.totalorder %v979_v2, 1 }
 0x27c   :  { %v1985_v17 = vmul.f32 -1.442695, %v2303_v38 }
 0x27d   :  { %2471 = vpow2.f32 %v1983_v21 }
 0x27e   :  { %2473 = vpow2.f32 %v1984_v14 }
 0x285   :  { %v2470_v36 = vpop.eup %2469 }
 0x286   :  { %v937_v29 = vadd.f32 1.0, %v2470_v36 }
 0x287   :  { %v2472_v49 = vpop.eup %2471 }
 0x288   :  { %2475 = vrcp.f32 %v937_v29  ;;  %v938_v46 = vadd.f32 1.0, %v2472_v49  ;;  %v2474_v5 = vpop.eup %2473 }
 0x289   :  { %2477 = vpow2.f32 %v1985_v17  ;;  %v951_v12 = vadd.f32 1.0, %v2474_v5 }
 0x28a   :  { %2479 = vrcp.f32 %v938_v46 }
 0x292   :  { %v2476_v13 = vpop.eup %2475 }
 0x293   :  { %v2478_v18 = vpop.eup %2477  ;;  %v959_v11 = vmul.f32 %v2476_v13, %v957_v9 }
 0x294   :  { %v2480_v25 = vpop.eup %2479  ;;  %v952_v14 = vadd.f32 1.0, %v2478_v18 }
 0x295   :  { %v961_v21 = vadd.f32 %v959_v11, %v3027_v20  ;;  %v960_v32 = vmul.f32 %v2480_v25, %v958_v7  ;;  %v982_v11 = vpop.permute.xlu1 %981 }
 0x296   :  { %vm984_vm5 = vcmp.eq.s32.totalorder %v982_v11, 1 }
 0x297   :  { %2481 = vtanh.f32 %v961_v21  ;;  %v962_v38 = vadd.f32 %v960_v32, %v3032_v27 }
 0x298   :  { %2483 = vrcp.f32 %v951_v12 }
 0x299   :  { %2485 = vtanh.f32 %v962_v38 }
 0x29a   :  { %2487 = vrcp.f32 %v952_v14 }
 0x2a1   :  { %v2482_v36 = vpop.eup %2481 }
 0x2a2   :  { %v2484_v17 = vpop.eup %2483  ;;  %v965_v29 = vsub.f32 %v3091_v43, %v2482_v36 }
 0x2a3   :  { %v2486_v49 = vpop.eup %2485 }
 0x2a4   :  { %v967_v46 = vmul.f32 %v2484_v17, %v965_v29  ;;  %v966_v16 = vsub.f32 %v3094_v55, %v2486_v49  ;;  %v2488_v5 = vpop.eup %2487 }
 0x2a6   :  { %v969_v9 = vadd.f32 %v2482_v36, %v967_v46  ;;  %v968_v20 = vmul.f32 %v2488_v5, %v966_v16 }
 0x2a8   :  { %v987_v13 = vsel %vm983_vm4, %v969_v9, 0.0  ;;  %v970_v27 = vadd.f32 %v2486_v49, %v968_v20  ;;  %v3143_v18 = vsel %vm983_vm4, %v969_v9, %v3091_v43 }
 0x2a9   :  { %990 = vst [vmem:[#allocation9 + $0x10] sm:$0xff] %v987_v13 }
 0x2aa   :  { %v3146_v7 = vsel %vm984_vm5, %v970_v27, %v3094_v55  ;;  %v988_v25 = vsel %vm984_vm5, %v970_v27, 0.0 }
 0x2ab   :  { %991 = vst [vmem:[#allocation9 + $0x18] sm:$0xff] %v988_v25  ;;  %v992_v12 = vpack.c.bf16 %v3146_v7, %v3143_v18 }
 0x2ad   :  { %1026 = vmatmul.mubr.bf16.vlgmr.msra.gmra.mrb[8].mxu0 %v992_v12  ;;  %2193 = vmatmul.mubr.bf16.vlgmr.msra.gmra.mrb[24].mxu1 %v992_v12 }
 0x2ae   :  { %1142 = vmatpush1.bf16.msra.mxu0 %v2854_v23  ;;  %2197 = vmatpush3.bf16.msra.mxu1 %v2898_v42 }
 0x2af   :  { %1143 = vmatprep.subr.bf16.mxu0 %v2856_v24  ;;  %2198 = vmatprep.subr.bf16.mxu1 %v3521_v0 }
 0x2b0   :  { %1173 = vmatprep.mubr.bf16.mxu0 %v3522_v59  ;;  %2212 = vmatprep.mubr.msk.bf16.mxu1 %vm2761_vm8, %v3521_v0 }
 0x2b2   :  { %1144 = vmatpush1.bf16.msra.mxu0 %v2859_v26  ;;  %2199 = vmatpush3.bf16.msra.mxu1 %v2911_v48 }
 0x2b3   :  { %1145 = vmatprep.subr.bf16.mxu0 %v2864_v28  ;;  %2200 = vmatprep.subr.bf16.mxu1 %v3521_v0 }
 0x2b6   :  { %1146 = vmatpush1.bf16.msra.mxu0 %v2866_v30  ;;  %2201 = vmatpush3.bf16.msra.mxu1 %v2923_v52 }
 0x2b7   :  { %1147 = vmatprep.subr.bf16.mxu0 %v2869_v31  ;;  %2202 = vmatprep.subr.bf16.mxu1 %v3521_v0 }
 0x2ba   :  { %1148 = vmatpush1.bf16.msra.mxu0 %v2872_v33  ;;  %2203 = vmatpush3.bf16.msra.mxu1 %v2934_v56 }
 0x2bb   :  { %1149 = vmatprep.subr.bf16.mxu0 %v2877_v35  ;;  %2204 = vmatprep.subr.bf16.mxu1 %v3521_v0 }
 0x2be   :  { %1150 = vmatpush1.bf16.msra.mxu0 %v2891_v39  ;;  %2205 = vmatpush3.bf16.msra.mxu1 %v2942_v58 }
 0x2bf   :  { %1151 = vmatprep.subr.bf16.mxu0 %v2896_v41  ;;  %2206 = vmatprep.subr.bf16.mxu1 %v3521_v0 }
 0x2c2   :  { %1152 = vmatpush1.bf16.msra.mxu0 %v2903_v44  ;;  %2207 = vmatpush3.bf16.msra.mxu1 %v2949_v62 }
 0x2c3   :  { %1153 = vmatprep.subr.bf16.mxu0 %v2907_v45  ;;  %2208 = vmatprep.subr.bf16.mxu1 %v3521_v0 }
 0x2c6   :  { %1154 = vmatpush1.bf16.msra.mxu0 %v2915_v50  ;;  %2209 = vmatpush3.bf16.msra.mxu1 %v2955_v1 }
 0x2c7   :  { %1155 = vmatprep.subr.bf16.mxu0 %v2920_v51  ;;  %2210 = vmatprep.subr.bf16.mxu1 %v3521_v0 }
 0x2ca   :  { %1156 = vmatpush1.bf16.msra.mxu0 %v2928_v54  ;;  %2211 = vmatpush3.bf16.msra.mxu1 %v2961_v4 }
 0x2cb   :  { %1289 = vmatprep.subr.bf16.mxu0 %v2852_v22  ;;  %2216 = vmatprep.subr.bf16.mxu1 %v3521_v0 }
 0x380   :  { %v1027_v23 = vpop.f32.mrb[8].mxu0  ;;  %v1070_v24 = vpop.f32.mrb[24].mxu1 }
 0x381   :  { %v2304_v26 = vadd.f32 %v1027_v23, %v3072_v19  ;;  %v1029_v43 = vpop.f32.mrb[9].mxu0  ;;  %v2194_v55 = vpop.f32.mrb[25].mxu1  ;;  %v1105_v11 = vadd.f32 %v3083_v15, %v1070_v24 }
 0x382   :  { %v1031_v21 = vpop.f32.mrb[10].mxu0  ;;  %v1073_v32 = vpop.f32.mrb[26].mxu1  ;;  %v2305_v22 = vadd.f32 %v1029_v43, %v3076_v61 }
 0x383   :  { %v1986_v38 = vmul.f32 -1.442695, %v2304_v26  ;;  %v2306_v14 = vadd.f32 %v1031_v21, %v3072_v19  ;;  %v1033_v36 = vpop.f32.mrb[11].mxu0  ;;  %v2195_v17 = vpop.f32.mrb[27].mxu1  ;;  %v1106_v23 = vadd.f32 %v3083_v15, %v1073_v32 }
 0x384   :  { %v2307_v29 = vadd.f32 %v1033_v36, %v3076_v61  ;;  %v1988_v49 = vmul.f32 -1.442695, %v2305_v22 }
 0x385   :  { %2489 = vpow2.f32 %v1986_v38  ;;  %v1987_v2 = vmul.f32 -1.442695, %v2306_v14 }
 0x386   :  { %v1989_v16 = vmul.f32 -1.442695, %v2307_v29 }
 0x387   :  { %2491 = vpow2.f32 %v1987_v2 }
 0x388   :  { %2493 = vpow2.f32 %v1988_v49  ;;  %v1127_v49 = vpop.permute.xlu0 %1126 }
 0x389   :  { %vm1131_vm6 = vcmp.eq.s32.totalorder %v1127_v49, 1 }
 0x38f   :  { %v2490_v46 = vpop.eup %2489 }
 0x390   :  { %v1085_v5 = vadd.f32 1.0, %v2490_v46 }
 0x391   :  { %v2492_v9 = vpop.eup %2491 }
 0x392   :  { %2495 = vrcp.f32 %v1085_v5  ;;  %v1086_v20 = vadd.f32 1.0, %v2492_v9  ;;  %v2494_v13 = vpop.eup %2493 }
 0x393   :  { %2497 = vpow2.f32 %v1989_v16  ;;  %v1099_v43 = vadd.f32 1.0, %v2494_v13  ;;  %v1130_v16 = vpop.permute.xlu1 %1129 }
 0x394   :  { %2499 = vrcp.f32 %v1086_v20  ;;  %vm1132_vm7 = vcmp.eq.s32.totalorder %v1130_v16, 1 }
 0x39c   :  { %v2496_v27 = vpop.eup %2495 }
 0x39d   :  { %v2498_v25 = vpop.eup %2497  ;;  %v1107_v12 = vmul.f32 %v2496_v27, %v1105_v11  ;;  %v3203_v27 = vld [vmem:[#allocation8] ss:$12 sps:$4 sm:$0xff]  }
 0x39e   :  { %v2500_v26 = vpop.eup %2499  ;;  %v1100_v14 = vadd.f32 1.0, %v2498_v25  ;;  %v3207_v25 = vld [vmem:[#allocation8 + $0x1c] ss:$12 sps:$4 sm:$0xff]  }
 0x39f   :  { %v1109_v55 = vadd.f32 %v1107_v12, %v3040_v37  ;;  %v1108_v21 = vmul.f32 %v2500_v26, %v1106_v23 }
 0x3a1   :  { %2501 = vtanh.f32 %v1109_v55  ;;  %v1110_v38 = vadd.f32 %v1108_v21, %v3046_v47 }
 0x3a2   :  { %2503 = vrcp.f32 %v1099_v43 }
 0x3a3   :  { %2505 = vtanh.f32 %v1110_v38 }
 0x3a4   :  { %2507 = vrcp.f32 %v1100_v14 }
 0x3ab   :  { %v2502_v36 = vpop.eup %2501 }
 0x3ac   :  { %v2504_v17 = vpop.eup %2503  ;;  %v1113_v24 = vsub.f32 %v3143_v18, %v2502_v36 }
 0x3ad   :  { %v2506_v2 = vpop.eup %2505 }
 0x3ae   :  { %v1115_v22 = vmul.f32 %v2504_v17, %v1113_v24  ;;  %v1114_v32 = vsub.f32 %v3146_v7, %v2506_v2  ;;  %v2508_v29 = vpop.eup %2507 }
 0x3b0   :  { %v1116_v46 = vmul.f32 %v2508_v29, %v1114_v32  ;;  %v1117_v37 = vadd.f32 %v2502_v36, %v1115_v22 }
 0x3b2   :  { %v1118_v5 = vadd.f32 %v2506_v2, %v1116_v46  ;;  %v1135_v47 = vsel %vm1131_vm6, %v1117_v37, 0.0  ;;  %v3196_v9 = vsel %vm1131_vm6, %v1117_v37, %v3143_v18  ;;  %v3214_v18 = vld [vmem:[#allocation8 + $0x18] ss:$12 sps:$4 sm:$0xff]  }
 0x3b3   :  { %1138 = vst [vmem:[#allocation9 + $0x20] sm:$0xff] %v1135_v47 }
 0x3b4   :  { %v3199_v20 = vsel %vm1132_vm7, %v1118_v5, %v3146_v7  ;;  %v1136_v13 = vsel %vm1132_vm7, %v1118_v5, 0.0 }
 0x3b5   :  { %1139 = vst [vmem:[#allocation9 + $0x28] sm:$0xff] %v1136_v13  ;;  %v1140_v11 = vpack.c.bf16 %v3199_v20, %v3196_v9  ;;  %v1275_v13 = vpop.permute.xlu0 %1274 }
 0x3b6   :  { %vm1279_vm9 = vcmp.eq.s32.totalorder %v1275_v13, 1 }
 0x3b7   :  { %1174 = vmatmul.mubr.bf16.vlgmr.msra.gmra.mrb[12].mxu0 %v1140_v11  ;;  %2213 = vmatmul.mubr.bf16.vlgmr.msra.gmra.mrb[28].mxu1 %v1140_v11 }
 0x3b8   :  { %1290 = vmatpush1.bf16.msra.mxu0 %v3203_v27  ;;  %2217 = vmatpush3.bf16.msra.mxu1 %v2898_v42 }
 0x3b9   :  { %1291 = vmatprep.subr.bf16.mxu0 %v3207_v25  ;;  %2218 = vmatprep.subr.bf16.mxu1 %v3521_v0 }
 0x3ba   :  { %1321 = vmatprep.mubr.bf16.mxu0 %v3522_v59  ;;  %2232 = vmatprep.mubr.msk.bf16.mxu1 %vm2761_vm8, %v3521_v0 }
 0x3bc   :  { %1292 = vmatpush1.bf16.msra.mxu0 %v3214_v18  ;;  %2219 = vmatpush3.bf16.msra.mxu1 %v2911_v48 }
 0x3bd   :  { %1293 = vmatprep.subr.bf16.mxu0 %v2864_v28  ;;  %2220 = vmatprep.subr.bf16.mxu1 %v3521_v0  ;;  %v3242_v28 = vld [vmem:[#allocation8 + $0x4] ss:$12 sps:$4 sm:$0xff]  }
 0x3c0   :  { %1294 = vmatpush1.bf16.msra.mxu0 %v2866_v30  ;;  %2221 = vmatpush3.bf16.msra.mxu1 %v2923_v52 }
 0x3c1   :  { %1295 = vmatprep.subr.bf16.mxu0 %v2869_v31  ;;  %2222 = vmatprep.subr.bf16.mxu1 %v3521_v0 }
 0x3c4   :  { %1296 = vmatpush1.bf16.msra.mxu0 %v2872_v33  ;;  %2223 = vmatpush3.bf16.msra.mxu1 %v2934_v56 }
 0x3c5   :  { %1297 = vmatprep.subr.bf16.mxu0 %v2877_v35  ;;  %2224 = vmatprep.subr.bf16.mxu1 %v3521_v0 }
 0x3c8   :  { %1298 = vmatpush1.bf16.msra.mxu0 %v2891_v39  ;;  %2225 = vmatpush3.bf16.msra.mxu1 %v2942_v58 }
 0x3c9   :  { %1299 = vmatprep.subr.bf16.mxu0 %v2896_v41  ;;  %2226 = vmatprep.subr.bf16.mxu1 %v3521_v0 }
 0x3cc   :  { %1300 = vmatpush1.bf16.msra.mxu0 %v2903_v44  ;;  %2227 = vmatpush3.bf16.msra.mxu1 %v2949_v62 }
 0x3cd   :  { %1301 = vmatprep.subr.bf16.mxu0 %v2907_v45  ;;  %2228 = vmatprep.subr.bf16.mxu1 %v3521_v0 }
 0x3d0   :  { %1302 = vmatpush1.bf16.msra.mxu0 %v2915_v50  ;;  %2229 = vmatpush3.bf16.msra.mxu1 %v2955_v1 }
 0x3d1   :  { %1303 = vmatprep.subr.bf16.mxu0 %v2920_v51  ;;  %2230 = vmatprep.subr.bf16.mxu1 %v3521_v0 }
 0x3d4   :  { %1304 = vmatpush1.bf16.msra.mxu0 %v2928_v54  ;;  %2231 = vmatpush3.bf16.msra.mxu1 %v2961_v4 }
 0x3d5   :  { %1437 = vmatprep.subr.bf16.mxu0 %v3242_v28  ;;  %2236 = vmatprep.subr.bf16.mxu1 %v3521_v0 }
 0x48a   :  { %v1175_v30 = vpop.f32.mrb[12].mxu0  ;;  %v1218_v31 = vpop.f32.mrb[28].mxu1 }
 0x48b   :  { %v2308_v33 = vadd.f32 %v1175_v30, %v3072_v19  ;;  %v1177_v35 = vpop.f32.mrb[13].mxu0  ;;  %v2214_v39 = vpop.f32.mrb[29].mxu1  ;;  %v1253_v43 = vadd.f32 %v3083_v15, %v1218_v31 }
 0x48c   :  { %v1179_v41 = vpop.f32.mrb[14].mxu0  ;;  %v1221_v42 = vpop.f32.mrb[30].mxu1  ;;  %v2309_v52 = vadd.f32 %v1177_v35, %v3076_v61 }
 0x48d   :  { %v1990_v44 = vmul.f32 -1.442695, %v2308_v33  ;;  %v2310_v45 = vadd.f32 %v1179_v41, %v3072_v19  ;;  %v1181_v48 = vpop.f32.mrb[15].mxu0  ;;  %v2215_v50 = vpop.f32.mrb[31].mxu1  ;;  %v1254_v14 = vadd.f32 %v3083_v15, %v1221_v42  ;;  %v3265_v42 = vld [vmem:[#allocation8 + $0x8] ss:$12 sps:$4 sm:$0xff]  }
 0x48e   :  { %v2311_v54 = vadd.f32 %v1181_v48, %v3076_v61  ;;  %v1992_v56 = vmul.f32 -1.442695, %v2309_v52  ;;  %v1278_v30 = vpop.permute.xlu1 %1277  ;;  %v3287_v48 = vld [vmem:[#allocation8 + $0x4c] ss:$12 sps:$4 sm:$0xff]   ;;  %v3291_v50 = vld [vmem:[#allocation8 + $0x48] ss:$12 sps:$4 sm:$0xff]  }
 0x48f   :  { %2509 = vpow2.f32 %v1990_v44  ;;  %v1991_v51 = vmul.f32 -1.442695, %v2310_v45  ;;  %vm1280_vm10 = vcmp.eq.s32.totalorder %v1278_v30, 1  ;;  %v3281_v44 = vld [vmem:[#allocation8 + $0x30] ss:$12 sps:$4 sm:$0xff]  }
 0x490   :  { %v1993_v62 = vmul.f32 -1.442695, %v2311_v54  ;;  %v3284_v45 = vld [vmem:[#allocation8 + $0x38] ss:$12 sps:$4 sm:$0xff]   ;;  %v3301_v54 = vld [vmem:[#allocation8 + $0x60] ss:$12 sps:$4 sm:$0xff]  }
 0x491   :  { %2511 = vpow2.f32 %v1991_v51  ;;  %v3294_v51 = vld [vmem:[#allocation8 + $0x50] ss:$12 sps:$4 sm:$0xff]  }
 0x492   :  { %2513 = vpow2.f32 %v1992_v56  ;;  %v3297_v52 = vld [vmem:[#allocation8 + $0x64] ss:$12 sps:$4 sm:$0xff]   ;;  %v3304_v56 = vld [vmem:[#allocation8 + $0x68] ss:$12 sps:$4 sm:$0xff]  }
 0x499   :  { %v2510_v58 = vpop.eup %2509 }
 0x49a   :  { %v1233_v7 = vadd.f32 1.0, %v2510_v58  ;;  %v3307_v58 = vld [vmem:[#allocation8 + $0x7c] ss:$12 sps:$4 sm:$0xff]  }
 0x49b   :  { %v2512_v12 = vpop.eup %2511 }
 0x49c   :  { %2515 = vrcp.f32 %v1233_v7  ;;  %v1234_v23 = vadd.f32 1.0, %v2512_v12  ;;  %v2514_v26 = vpop.eup %2513  ;;  %v3314_v7 = vld [vmem:[#allocation8 + $0x80] ss:$12 sps:$4 sm:$0xff]  }
 0x49d   :  { %2517 = vpow2.f32 %v1993_v62  ;;  %v1247_v17 = vadd.f32 1.0, %v2514_v26  ;;  %v3311_v62 = vld [vmem:[#allocation8 + $0x78] ss:$12 sps:$4 sm:$0xff]   ;;  %v3317_v12 = vld [vmem:[#allocation8 + $0x94] ss:$12 sps:$4 sm:$0xff]  }
 0x49e   :  { %2519 = vrcp.f32 %v1234_v23  ;;  %v3321_v23 = vld [vmem:[#allocation8 + $0x90] ss:$12 sps:$4 sm:$0xff]   ;;  %v3325_v26 = vld [vmem:[#allocation8 + $0xac] ss:$12 sps:$4 sm:$0xff]  }
 0x4a6   :  { %v2516_v55 = vpop.eup %2515 }
 0x4a7   :  { %v2518_v21 = vpop.eup %2517  ;;  %v1255_v38 = vmul.f32 %v2516_v55, %v1253_v43  ;;  %v3329_v43 = vld [vmem:[#allocation8 + $0xa8] ss:$12 sps:$4 sm:$0xff]  }
 0x4a8   :  { %v2520_v36 = vpop.eup %2519  ;;  %v1248_v32 = vadd.f32 1.0, %v2518_v21 }
 0x4a9   :  { %v1257_v24 = vadd.f32 %v1255_v38, %v3037_v34  ;;  %v1256_v2 = vmul.f32 %v2520_v36, %v1254_v14 }
 0x4ab   :  { %2521 = vtanh.f32 %v1257_v24  ;;  %v1258_v22 = vadd.f32 %v1256_v2, %v3043_v40 }
 0x4ac   :  { %2523 = vrcp.f32 %v1247_v17 }
 0x4ad   :  { %2525 = vtanh.f32 %v1258_v22 }
 0x4ae   :  { %2527 = vrcp.f32 %v1248_v32 }
 0x4b5   :  { %v2522_v29 = vpop.eup %2521 }
 0x4b6   :  { %v2524_v49 = vpop.eup %2523  ;;  %v1261_v46 = vsub.f32 %v3196_v9, %v2522_v29 }
 0x4b7   :  { %v2526_v37 = vpop.eup %2525 }
 0x4b8   :  { %v1263_v16 = vmul.f32 %v2524_v49, %v1261_v46  ;;  %v1262_v5 = vsub.f32 %v3199_v20, %v2526_v37  ;;  %v2528_v47 = vpop.eup %2527 }
 0x4ba   :  { %v1264_v11 = vmul.f32 %v2528_v47, %v1262_v5  ;;  %v1265_v34 = vadd.f32 %v2522_v29, %v1263_v16 }
 0x4bc   :  { %v1266_v31 = vadd.f32 %v2526_v37, %v1264_v11  ;;  %v1283_v40 = vsel %vm1279_vm9, %v1265_v34, 0.0  ;;  %v3257_v33 = vsel %vm1279_vm9, %v1265_v34, %v3196_v9  ;;  %v3274_v9 = vld [vmem:[#allocation8 + $0x20] ss:$12 sps:$4 sm:$0xff]  }
 0x4bd   :  { %1286 = vst [vmem:[#allocation9 + $0x30] sm:$0xff] %v1283_v40 }
 0x4be   :  { %v3260_v35 = vsel %vm1280_vm10, %v1266_v31, %v3199_v20  ;;  %v1284_v39 = vsel %vm1280_vm10, %v1266_v31, 0.0  ;;  %v3277_v20 = vld [vmem:[#allocation8 + $0x34] ss:$12 sps:$4 sm:$0xff]  }
 0x4bf   :  { %1287 = vst [vmem:[#allocation9 + $0x38] sm:$0xff] %v1284_v39  ;;  %v1288_v41 = vpack.c.bf16 %v3260_v35, %v3257_v33 }
 0x4c1   :  { %1322 = vmatmul.mubr.bf16.vlgmr.msra.gmra.mrb[16].mxu0 %v1288_v41  ;;  %2233 = vmatmul.mubr.bf16.vlgmr.msra.gmra.mrb[32].mxu1 %v1288_v41 }
 0x4c2   :  { %1438 = vmatpush1.bf16.msra.mxu0 %v3203_v27  ;;  %2237 = vmatpush3.bf16.msra.mxu1 %v3265_v42 }
 0x4c3   :  { %1439 = vmatprep.subr.bf16.mxu0 %v3207_v25  ;;  %2238 = vmatprep.subr.bf16.mxu1 %v3521_v0 }
 0x4c4   :  { %1469 = vmatprep.mubr.bf16.mxu0 %v3522_v59  ;;  %2252 = vmatprep.mubr.msk.bf16.mxu1 %vm2761_vm8, %v3521_v0 }
 0x4c6   :  { %1440 = vmatpush1.bf16.msra.mxu0 %v3214_v18  ;;  %2239 = vmatpush3.bf16.msra.mxu1 %v3274_v9 }
 0x4c7   :  { %1441 = vmatprep.subr.bf16.mxu0 %v3277_v20  ;;  %2240 = vmatprep.subr.bf16.mxu1 %v3521_v0 }
 0x4ca   :  { %1442 = vmatpush1.bf16.msra.mxu0 %v3281_v44  ;;  %2241 = vmatpush3.bf16.msra.mxu1 %v3284_v45 }
 0x4cb   :  { %1443 = vmatprep.subr.bf16.mxu0 %v3287_v48  ;;  %2242 = vmatprep.subr.bf16.mxu1 %v3521_v0 }
 0x4ce   :  { %1444 = vmatpush1.bf16.msra.mxu0 %v3291_v50  ;;  %2243 = vmatpush3.bf16.msra.mxu1 %v3294_v51 }
 0x4cf   :  { %1445 = vmatprep.subr.bf16.mxu0 %v3297_v52  ;;  %2244 = vmatprep.subr.bf16.mxu1 %v3521_v0 }
 0x4d2   :  { %1446 = vmatpush1.bf16.msra.mxu0 %v3301_v54  ;;  %2245 = vmatpush3.bf16.msra.mxu1 %v3304_v56 }
 0x4d3   :  { %1447 = vmatprep.subr.bf16.mxu0 %v3307_v58  ;;  %2246 = vmatprep.subr.bf16.mxu1 %v3521_v0 }
 0x4d6   :  { %1448 = vmatpush1.bf16.msra.mxu0 %v3311_v62  ;;  %2247 = vmatpush3.bf16.msra.mxu1 %v3314_v7 }
 0x4d7   :  { %1449 = vmatprep.subr.bf16.mxu0 %v3317_v12  ;;  %2248 = vmatprep.subr.bf16.mxu1 %v3521_v0 }
 0x4da   :  { %1450 = vmatpush1.bf16.msra.mxu0 %v3321_v23  ;;  %2249 = vmatpush3.bf16.msra.mxu1 %v2955_v1 }
 0x4db   :  { %1451 = vmatprep.subr.bf16.mxu0 %v3325_v26  ;;  %2250 = vmatprep.subr.bf16.mxu1 %v3521_v0 }
 0x4de   :  { %1452 = vmatpush1.bf16.msra.mxu0 %v3329_v43  ;;  %2251 = vmatpush3.bf16.msra.mxu1 %v2961_v4 }
 0x4df   :  { %1585 = vmatprep.subr.bf16.mxu0 %v3242_v28  ;;  %2256 = vmatprep.subr.bf16.mxu1 %v3521_v0 }
 0x594   :  { %v1323_v55 = vpop.f32.mrb[16].mxu0  ;;  %v1366_v21 = vpop.f32.mrb[32].mxu1 }
 0x595   :  { %v2312_v1 = vadd.f32 %v1323_v55, %v3072_v19  ;;  %v1325_v38 = vpop.f32.mrb[17].mxu0  ;;  %v2234_v14 = vpop.f32.mrb[33].mxu1  ;;  %v1401_v34 = vadd.f32 %v3083_v15, %v1366_v21 }
 0x596   :  { %v1327_v36 = vpop.f32.mrb[18].mxu0  ;;  %v1369_v17 = vpop.f32.mrb[34].mxu1  ;;  %v2313_v4 = vadd.f32 %v1325_v38, %v3076_v61 }
 0x597   :  { %v1994_v24 = vmul.f32 -1.442695, %v2312_v1  ;;  %v2314_v2 = vadd.f32 %v1327_v36, %v3072_v19  ;;  %v1329_v22 = vpop.f32.mrb[19].mxu0  ;;  %v2235_v32 = vpop.f32.mrb[35].mxu1  ;;  %v1402_v39 = vadd.f32 %v3083_v15, %v1369_v17 }
 0x598   :  { %v2315_v49 = vadd.f32 %v1329_v22, %v3076_v61  ;;  %v1996_v46 = vmul.f32 -1.442695, %v2313_v4  ;;  %v1423_v4 = vpop.permute.xlu0 %1422 }
 0x599   :  { %2529 = vpow2.f32 %v1994_v24  ;;  %v1995_v29 = vmul.f32 -1.442695, %v2314_v2  ;;  %vm1427_vm11 = vcmp.eq.s32.totalorder %v1423_v4, 1 }
 0x59a   :  { %v1997_v16 = vmul.f32 -1.442695, %v2315_v49 }
 0x59b   :  { %2531 = vpow2.f32 %v1995_v29 }
 0x59c   :  { %2533 = vpow2.f32 %v1996_v46  ;;  %v1426_v46 = vpop.permute.xlu1 %1425 }
 0x59d   :  { %vm1428_vm12 = vcmp.eq.s32.totalorder %v1426_v46, 1 }
 0x5a3   :  { %v2530_v37 = vpop.eup %2529 }
 0x5a4   :  { %v1381_v5 = vadd.f32 1.0, %v2530_v37 }
 0x5a5   :  { %v2532_v47 = vpop.eup %2531 }
 0x5a6   :  { %2535 = vrcp.f32 %v1381_v5  ;;  %v1382_v13 = vadd.f32 1.0, %v2532_v47  ;;  %v2534_v11 = vpop.eup %2533 }
 0x5a7   :  { %2537 = vpow2.f32 %v1997_v16  ;;  %v1395_v55 = vadd.f32 1.0, %v2534_v11 }
 0x5a8   :  { %2539 = vrcp.f32 %v1382_v13 }
 0x5b0   :  { %v2536_v30 = vpop.eup %2535 }
 0x5b1   :  { %v2538_v31 = vpop.eup %2537  ;;  %v1403_v40 = vmul.f32 %v2536_v30, %v1401_v34 }
 0x5b2   :  { %v2540_v41 = vpop.eup %2539  ;;  %v1396_v36 = vadd.f32 1.0, %v2538_v31 }
 0x5b3   :  { %v1405_v1 = vadd.f32 %v1403_v40, %v3052_v57  ;;  %v1404_v38 = vmul.f32 %v2540_v41, %v1402_v39 }
 0x5b5   :  { %2541 = vtanh.f32 %v1405_v1  ;;  %v1406_v14 = vadd.f32 %v1404_v38, %v3058_v63 }
 0x5b6   :  { %2543 = vrcp.f32 %v1395_v55 }
 0x5b7   :  { %2545 = vtanh.f32 %v1406_v14 }
 0x5b8   :  { %2547 = vrcp.f32 %v1396_v36 }
 0x5bf   :  { %v2542_v24 = vpop.eup %2541 }
 0x5c0   :  { %v2544_v2 = vpop.eup %2543  ;;  %v1409_v21 = vsub.f32 %v3257_v33, %v2542_v24 }
 0x5c1   :  { %v2546_v22 = vpop.eup %2545 }
 0x5c2   :  { %v1411_v32 = vmul.f32 %v2544_v2, %v1409_v21  ;;  %v1410_v17 = vsub.f32 %v3260_v35, %v2546_v22  ;;  %v2548_v29 = vpop.eup %2547 }
 0x5c4   :  { %v1412_v49 = vmul.f32 %v2548_v29, %v1410_v17  ;;  %v1413_v57 = vadd.f32 %v2542_v24, %v1411_v32 }
 0x5c6   :  { %v1414_v37 = vadd.f32 %v2546_v22, %v1412_v49  ;;  %v1431_v63 = vsel %vm1427_vm11, %v1413_v57, 0.0  ;;  %v3346_v16 = vsel %vm1427_vm11, %v1413_v57, %v3257_v33  ;;  %v3381_v33 = vld [vmem:[#allocation8 + $0x98] ss:$12 sps:$4 sm:$0xff]  }
 0x5c7   :  { %1434 = vst [vmem:[#allocation9 + $0x40] sm:$0xff] %v1431_v63 }
 0x5c8   :  { %v3349_v5 = vsel %vm1428_vm12, %v1414_v37, %v3260_v35  ;;  %v1432_v47 = vsel %vm1428_vm12, %v1414_v37, 0.0  ;;  %v3387_v35 = vld [vmem:[#allocation8 + $0xb0] ss:$12 sps:$4 sm:$0xff]  }
 0x5c9   :  { %1435 = vst [vmem:[#allocation9 + $0x48] sm:$0xff] %v1432_v47  ;;  %v1436_v13 = vpack.c.bf16 %v3349_v5, %v3346_v16 }
 0x5cb   :  { %1470 = vmatmul.mubr.bf16.vlgmr.msra.gmra.mrb[20].mxu0 %v1436_v13  ;;  %2253 = vmatmul.mubr.bf16.vlgmr.msra.gmra.mrb[36].mxu1 %v1436_v13 }
 0x5cc   :  { %1586 = vmatpush1.bf16.msra.mxu0 %v3203_v27  ;;  %2257 = vmatpush3.bf16.msra.mxu1 %v3265_v42 }
 0x5cd   :  { %1587 = vmatprep.subr.bf16.mxu0 %v3207_v25  ;;  %2258 = vmatprep.subr.bf16.mxu1 %v3521_v0 }
 0x5ce   :  { %1617 = vmatprep.mubr.bf16.mxu0 %v3522_v59  ;;  %2272 = vmatprep.mubr.msk.bf16.mxu1 %vm2761_vm8, %v3521_v0 }
 0x5d0   :  { %1588 = vmatpush1.bf16.msra.mxu0 %v3214_v18  ;;  %2259 = vmatpush3.bf16.msra.mxu1 %v3274_v9 }
 0x5d1   :  { %1589 = vmatprep.subr.bf16.mxu0 %v3277_v20  ;;  %2260 = vmatprep.subr.bf16.mxu1 %v3521_v0 }
 0x5d4   :  { %1590 = vmatpush1.bf16.msra.mxu0 %v3281_v44  ;;  %2261 = vmatpush3.bf16.msra.mxu1 %v3284_v45 }
 0x5d5   :  { %1591 = vmatprep.subr.bf16.mxu0 %v3287_v48  ;;  %2262 = vmatprep.subr.bf16.mxu1 %v3521_v0 }
 0x5d8   :  { %1592 = vmatpush1.bf16.msra.mxu0 %v3291_v50  ;;  %2263 = vmatpush3.bf16.msra.mxu1 %v3294_v51 }
 0x5d9   :  { %1593 = vmatprep.subr.bf16.mxu0 %v3297_v52  ;;  %2264 = vmatprep.subr.bf16.mxu1 %v3521_v0 }
 0x5dc   :  { %1594 = vmatpush1.bf16.msra.mxu0 %v3301_v54  ;;  %2265 = vmatpush3.bf16.msra.mxu1 %v3304_v56 }
 0x5dd   :  { %1595 = vmatprep.subr.bf16.mxu0 %v3307_v58  ;;  %2266 = vmatprep.subr.bf16.mxu1 %v3521_v0 }
 0x5e0   :  { %1596 = vmatpush1.bf16.msra.mxu0 %v3311_v62  ;;  %2267 = vmatpush3.bf16.msra.mxu1 %v3314_v7 }
 0x5e1   :  { %1597 = vmatprep.subr.bf16.mxu0 %v3317_v12  ;;  %2268 = vmatprep.subr.bf16.mxu1 %v3521_v0 }
 0x5e4   :  { %1598 = vmatpush1.bf16.msra.mxu0 %v3321_v23  ;;  %2269 = vmatpush3.bf16.msra.mxu1 %v3381_v33 }
 0x5e5   :  { %1599 = vmatprep.subr.bf16.mxu0 %v3325_v26  ;;  %2270 = vmatprep.subr.bf16.mxu1 %v3521_v0 }
 0x5e8   :  { %1600 = vmatpush1.bf16.msra.mxu0 %v3329_v43  ;;  %2271 = vmatpush3.bf16.msra.mxu1 %v3387_v35 }
 0x5e9   :  { %1733 = vmatprep.subr.bf16.mxu0 %v3242_v28  ;;  %2276 = vmatprep.subr.bf16.mxu1 %v3521_v0 }
 0x69e   :  { %v1471_v11 = vpop.f32.mrb[20].mxu0  ;;  %v1514_v34 = vpop.f32.mrb[36].mxu1 }
 0x69f   :  { %v2316_v30 = vadd.f32 %v1471_v11, %v3072_v19  ;;  %v1473_v31 = vpop.f32.mrb[21].mxu0  ;;  %v2254_v40 = vpop.f32.mrb[37].mxu1  ;;  %v1549_v49 = vadd.f32 %v3083_v15, %v1514_v34 }
 0x6a0   :  { %v1475_v39 = vpop.f32.mrb[22].mxu0  ;;  %v1517_v41 = vpop.f32.mrb[38].mxu1  ;;  %v2317_v28 = vadd.f32 %v1473_v31, %v3076_v61 }
 0x6a1   :  { %v1998_v55 = vmul.f32 -1.442695, %v2316_v30  ;;  %v2318_v1 = vadd.f32 %v1475_v39, %v3072_v19  ;;  %v1477_v38 = vpop.f32.mrb[23].mxu0  ;;  %v2255_v14 = vpop.f32.mrb[39].mxu1  ;;  %v1550_v63 = vadd.f32 %v3083_v15, %v1517_v41 }
 0x6a2   :  { %v2319_v24 = vadd.f32 %v1477_v38, %v3076_v61  ;;  %v2000_v2 = vmul.f32 -1.442695, %v2317_v28  ;;  %v1571_v14 = vpop.permute.xlu0 %1570  ;;  %v1574_v28 = vpop.permute.xlu1 %1573 }
 0x6a3   :  { %2549 = vpow2.f32 %v1998_v55  ;;  %v1999_v36 = vmul.f32 -1.442695, %v2318_v1  ;;  %vm1575_vm13 = vcmp.eq.s32.totalorder %v1571_v14, 1  ;;  %vm1576_vm14 = vcmp.eq.s32.totalorder %v1574_v28, 1 }
 0x6a4   :  { %v2001_v22 = vmul.f32 -1.442695, %v2319_v24 }
 0x6a5   :  { %2551 = vpow2.f32 %v1999_v36 }
 0x6a6   :  { %2553 = vpow2.f32 %v2000_v2 }
 0x6ad   :  { %v2550_v21 = vpop.eup %2549 }
 0x6ae   :  { %v1529_v32 = vadd.f32 1.0, %v2550_v21 }
 0x6af   :  { %v2552_v17 = vpop.eup %2551 }
 0x6b0   :  { %2555 = vrcp.f32 %v1529_v32  ;;  %v1530_v29 = vadd.f32 1.0, %v2552_v17  ;;  %v2554_v4 = vpop.eup %2553 }
 0x6b1   :  { %2557 = vpow2.f32 %v2001_v22  ;;  %v1543_v13 = vadd.f32 1.0, %v2554_v4 }
 0x6b2   :  { %2559 = vrcp.f32 %v1530_v29 }
 0x6ba   :  { %v2556_v57 = vpop.eup %2555 }
 0x6bb   :  { %v2558_v46 = vpop.eup %2557  ;;  %v1551_v37 = vmul.f32 %v2556_v57, %v1549_v49 }
 0x6bc   :  { %v2560_v47 = vpop.eup %2559  ;;  %v1544_v40 = vadd.f32 1.0, %v2558_v46 }
 0x6bd   :  { %v1553_v11 = vadd.f32 %v1551_v37, %v3049_v53  ;;  %v1552_v30 = vmul.f32 %v2560_v47, %v1550_v63 }
 0x6bf   :  { %2561 = vtanh.f32 %v1553_v11  ;;  %v1554_v31 = vadd.f32 %v1552_v30, %v3055_v60 }
 0x6c0   :  { %2563 = vrcp.f32 %v1543_v13 }
 0x6c1   :  { %2565 = vtanh.f32 %v1554_v31 }
 0x6c2   :  { %2567 = vrcp.f32 %v1544_v40  ;;  %v1719_v40 = vpop.permute.xlu0 %1718 }
 0x6c9   :  { %v2562_v39 = vpop.eup %2561 }
 0x6ca   :  { %v2564_v55 = vpop.eup %2563  ;;  %v1557_v34 = vsub.f32 %v3346_v16, %v2562_v39 }
 0x6cb   :  { %v2566_v1 = vpop.eup %2565 }
 0x6cc   :  { %v1559_v38 = vmul.f32 %v2564_v55, %v1557_v34  ;;  %v1558_v15 = vsub.f32 %v3349_v5, %v2566_v1  ;;  %v2568_v41 = vpop.eup %2567  ;;  %v1722_v55 = vpop.permute.xlu1 %1721 }
 0x6cd   :  { %vm1724_vm15 = vcmp.eq.s32.totalorder %v1722_v55, 1 }
 0x6ce   :  { %v1560_v36 = vmul.f32 %v2568_v41, %v1558_v15  ;;  %v1561_v53 = vadd.f32 %v2562_v39, %v1559_v38 }
 0x6d0   :  { %v1562_v24 = vadd.f32 %v2566_v1, %v1560_v36  ;;  %v1579_v60 = vsel %vm1575_vm13, %v1561_v53, 0.0  ;;  %v3403_v2 = vsel %vm1575_vm13, %v1561_v53, %v3346_v16 }
 0x6d1   :  { %1582 = vst [vmem:[#allocation9 + $0x50] sm:$0xff] %v1579_v60 }
 0x6d2   :  { %v3406_v21 = vsel %vm1576_vm14, %v1562_v24, %v3349_v5  ;;  %v1580_v22 = vsel %vm1576_vm14, %v1562_v24, 0.0 }
 0x6d3   :  { %1583 = vst [vmem:[#allocation9 + $0x58] sm:$0xff] %v1580_v22  ;;  %v1584_v32 = vpack.c.bf16 %v3406_v21, %v3403_v2 }
 0x6d5   :  { %1618 = vmatmul.mubr.bf16.vlgmr.msra.gmra.mrb[24].mxu0 %v1584_v32  ;;  %2273 = vmatmul.mubr.bf16.vlgmr.msra.gmra.mrb[40].mxu1 %v1584_v32 }
 0x6d6   :  { %1734 = vmatpush1.bf16.msra.mxu0 %v3203_v27  ;;  %2277 = vmatpush3.bf16.msra.mxu1 %v3265_v42 }
 0x6d7   :  { %1735 = vmatprep.subr.bf16.mxu0 %v3207_v25  ;;  %2278 = vmatprep.subr.bf16.mxu1 %v3521_v0 }
 0x6d8   :  { %1765 = vmatprep.mubr.bf16.mxu0 %v3522_v59  ;;  %2292 = vmatprep.mubr.msk.bf16.mxu1 %vm2761_vm8, %v3521_v0  ;;  %vm1723_vm8 = vcmp.eq.s32.totalorder %v1719_v40, 1 }
 0x6da   :  { %1736 = vmatpush1.bf16.msra.mxu0 %v3214_v18  ;;  %2279 = vmatpush3.bf16.msra.mxu1 %v3274_v9 }
 0x6db   :  { %1737 = vmatprep.subr.bf16.mxu0 %v3277_v20  ;;  %2280 = vmatprep.subr.bf16.mxu1 %v3521_v0 }
 0x6de   :  { %1738 = vmatpush1.bf16.msra.mxu0 %v3281_v44  ;;  %2281 = vmatpush3.bf16.msra.mxu1 %v3284_v45 }
 0x6df   :  { %1739 = vmatprep.subr.bf16.mxu0 %v3287_v48  ;;  %2282 = vmatprep.subr.bf16.mxu1 %v3521_v0 }
 0x6e2   :  { %1740 = vmatpush1.bf16.msra.mxu0 %v3291_v50  ;;  %2283 = vmatpush3.bf16.msra.mxu1 %v3294_v51 }
 0x6e3   :  { %1741 = vmatprep.subr.bf16.mxu0 %v3297_v52  ;;  %2284 = vmatprep.subr.bf16.mxu1 %v3521_v0 }
 0x6e6   :  { %1742 = vmatpush1.bf16.msra.mxu0 %v3301_v54  ;;  %2285 = vmatpush3.bf16.msra.mxu1 %v3304_v56 }
 0x6e7   :  { %1743 = vmatprep.subr.bf16.mxu0 %v3307_v58  ;;  %2286 = vmatprep.subr.bf16.mxu1 %v3521_v0 }
 0x6ea   :  { %1744 = vmatpush1.bf16.msra.mxu0 %v3311_v62  ;;  %2287 = vmatpush3.bf16.msra.mxu1 %v3314_v7 }
 0x6eb   :  { %1745 = vmatprep.subr.bf16.mxu0 %v3317_v12  ;;  %2288 = vmatprep.subr.bf16.mxu1 %v3521_v0 }
 0x6ee   :  { %1746 = vmatpush1.bf16.msra.mxu0 %v3321_v23  ;;  %2289 = vmatpush3.bf16.msra.mxu1 %v3381_v33 }
 0x6ef   :  { %1747 = vmatprep.subr.bf16.mxu0 %v3325_v26  ;;  %2290 = vmatprep.subr.bf16.mxu1 %v3521_v0  ;;  %v3450_v26 = vld [vmem:[%s3514_s5] ss:$0 sm:$0xff]  ;;  %s2763_s5 = smov [#allocation9]  }
 0x6f0   :  { %s1892_s23 = sshll.u32 %s2763_s5, 4  ;;  %s1893_s23 = int_to_ptr.vmem [resolvable:$true] %s1892_s23 }
 0x6f1   :  { %s2700_s25 = scalar_lea.vmem %s1893_s23, 2048  ;;  %p2705_p11 = scmp.lt.s32.totalorder %s1893_s23, %s1893_s23 }
 0x6f2   :  { %1748 = vmatpush1.bf16.msra.mxu0 %v3329_v43  ;;  %2291 = vmatpush3.bf16.msra.mxu1 %v3387_v35  ;;  %p2701_p10 = scmp.ne.s32.totalorder %s1893_s23, %s2700_s25  ;;  %p2706_p12 = scmp.lt.s32.totalorder %s2700_s25, %s2700_s25 }
 0x6f4   :  { %p2707_p13 = por %p2706_p12, %p2705_p11 }
 0x6f6   :  { %p2708_p0 = pnand %p2707_p13, %p2701_p10 }
 0x7a8   :  { %v1619_v59 = vpop.f32.mrb[24].mxu0  ;;  %v1662_v27 = vpop.f32.mrb[40].mxu1 }
 0x7a9   :  { %v2320_v25 = vadd.f32 %v1619_v59, %v3072_v19  ;;  %v1621_v18 = vpop.f32.mrb[25].mxu0  ;;  %v2274_v42 = vpop.f32.mrb[41].mxu1  ;;  %v1697_v43 = vadd.f32 %v3450_v26, %v1662_v27 }
 0x7aa   :  { %v1623_v9 = vpop.f32.mrb[26].mxu0  ;;  %v1665_v20 = vpop.f32.mrb[42].mxu1  ;;  %v2321_v0 = vadd.f32 %v1621_v18, %v3076_v61 }
 0x7ab   :  { %v2002_v44 = vmul.f32 -1.442695, %v2320_v25  ;;  %v2322_v45 = vadd.f32 %v1623_v9, %v3072_v19  ;;  %v1625_v48 = vpop.f32.mrb[27].mxu0  ;;  %v2275_v50 = vpop.f32.mrb[43].mxu1  ;;  %v1698_v35 = vadd.f32 %v3450_v26, %v1665_v20 }
 0x7ac   :  { %v2323_v52 = vadd.f32 %v1625_v48, %v3076_v61  ;;  %v2004_v54 = vmul.f32 -1.442695, %v2321_v0 }
 0x7ad   :  { %2569 = vpow2.f32 %v2002_v44  ;;  %v2003_v51 = vmul.f32 -1.442695, %v2322_v45 }
 0x7ae   :  { %v2005_v58 = vmul.f32 -1.442695, %v2323_v52 }
 0x7af   :  { %2571 = vpow2.f32 %v2003_v51 }
 0x7b0   :  { %2573 = vpow2.f32 %v2004_v54 }
 0x7b7   :  { %v2570_v56 = vpop.eup %2569 }
 0x7b8   :  { %v1677_v62 = vadd.f32 1.0, %v2570_v56 }
 0x7b9   :  { %v2572_v7 = vpop.eup %2571 }
 0x7ba   :  { %2575 = vrcp.f32 %v1677_v62  ;;  %v1678_v12 = vadd.f32 1.0, %v2572_v7  ;;  %v2574_v23 = vpop.eup %2573 }
 0x7bb   :  { %2577 = vpow2.f32 %v2005_v58  ;;  %v1691_v29 = vadd.f32 1.0, %v2574_v23 }
 0x7bc   :  { %2579 = vrcp.f32 %v1678_v12 }
 0x7c4   :  { %v2576_v16 = vpop.eup %2575 }
 0x7c5   :  { %v2578_v5 = vpop.eup %2577  ;;  %v1699_v33 = vmul.f32 %v2576_v16, %v1697_v43 }
 0x7c6   :  { %v2580_v17 = vpop.eup %2579  ;;  %v1692_v46 = vadd.f32 1.0, %v2578_v5 }
 0x7c7   :  { %v1701_v4 = vadd.f32 %v1699_v33, %v3064_v6  ;;  %v1700_v49 = vmul.f32 %v2580_v17, %v1698_v35  ;;  %v1867_v33 = vpop.permute.xlu0 %1866 }
 0x7c8   :  { %vm1871_vm0 = vcmp.eq.s32.totalorder %v1867_v33, 1 }
 0x7c9   :  { %2581 = vtanh.f32 %v1701_v4  ;;  %v1702_v57 = vadd.f32 %v1700_v49, %v3070_v10 }
 0x7ca   :  { %2583 = vrcp.f32 %v1691_v29 }
 0x7cb   :  { %2585 = vtanh.f32 %v1702_v57 }
 0x7cc   :  { %2587 = vrcp.f32 %v1692_v46 }
 0x7d3   :  { %v2582_v37 = vpop.eup %2581 }
 0x7d4   :  { %v2584_v63 = vpop.eup %2583  ;;  %v1705_v47 = vsub.f32 %v3403_v2, %v2582_v37 }
 0x7d5   :  { %v2586_v13 = vpop.eup %2585 }
 0x7d6   :  { %v1707_v11 = vmul.f32 %v2584_v63, %v1705_v47  ;;  %v1706_v30 = vsub.f32 %v3406_v21, %v2586_v13  ;;  %v2588_v31 = vpop.eup %2587 }
 0x7d8   :  { %v1708_v39 = vmul.f32 %v2588_v31, %v1706_v30  ;;  %v1709_v6 = vadd.f32 %v2582_v37, %v1707_v11 }
 0x7da   :  { %v1710_v34 = vadd.f32 %v2586_v13, %v1708_v39  ;;  %v1727_v10 = vsel %vm1723_vm8, %v1709_v6, 0.0  ;;  %v3459_v1 = vsel %vm1723_vm8, %v1709_v6, %v3403_v2 }
 0x7db   :  { %1730 = vst [vmem:[#allocation9 + $0x60] sm:$0xff] %v1727_v10 }
 0x7dc   :  { %v3462_v38 = vsel %vm1724_vm15, %v1710_v34, %v3406_v21  ;;  %v1728_v15 = vsel %vm1724_vm15, %v1710_v34, 0.0 }
 0x7dd   :  { %1731 = vst [vmem:[#allocation9 + $0x68] sm:$0xff] %v1728_v15  ;;  %v1732_v41 = vpack.c.bf16 %v3462_v38, %v3459_v1 }
 0x7df   :  { %1766 = vmatmul.mubr.bf16.vlgmr.msra.gmra.mrb[28].mxu0 %v1732_v41  ;;  %2293 = vmatmul.mubr.bf16.vlgmr.msra.gmra.mrb[44].mxu1 %v1732_v41 }
 0x8b2   :  { %v1767_v14 = vpop.f32.mrb[28].mxu0  ;;  %v1810_v36 = vpop.f32.mrb[44].mxu1 }
 0x8b3   :  { %v2324_v53 = vadd.f32 %v1767_v14, %v3072_v19  ;;  %v1769_v28 = vpop.f32.mrb[29].mxu0  ;;  %v2294_v24 = vpop.f32.mrb[45].mxu1  ;;  %v1845_v50 = vadd.f32 %v3450_v26, %v1810_v36 }
 0x8b4   :  { %v1771_v60 = vpop.f32.mrb[30].mxu0  ;;  %v1813_v22 = vpop.f32.mrb[46].mxu1  ;;  %v2325_v25 = vadd.f32 %v1769_v28, %v3076_v61 }
 0x8b5   :  { %v2006_v2 = vmul.f32 -1.442695, %v2324_v53  ;;  %v2326_v32 = vadd.f32 %v1771_v60, %v3072_v19  ;;  %v1773_v21 = vpop.f32.mrb[31].mxu0  ;;  %v2295_v59 = vpop.f32.mrb[47].mxu1  ;;  %v1846_v54 = vadd.f32 %v3450_v26, %v1813_v22 }
 0x8b6   :  { %v2327_v18 = vadd.f32 %v1773_v21, %v3076_v61  ;;  %v2008_v42 = vmul.f32 -1.442695, %v2325_v25 }
 0x8b7   :  { %2589 = vpow2.f32 %v2006_v2  ;;  %v2007_v27 = vmul.f32 -1.442695, %v2326_v32 }
 0x8b8   :  { %v2009_v20 = vmul.f32 -1.442695, %v2327_v18 }
 0x8b9   :  { %2591 = vpow2.f32 %v2007_v27 }
 0x8ba   :  { %2593 = vpow2.f32 %v2008_v42 }
 0x8c1   :  { %v2590_v9 = vpop.eup %2589 }
 0x8c2   :  { %v1825_v44 = vadd.f32 1.0, %v2590_v9 }
 0x8c3   :  { %v2592_v45 = vpop.eup %2591 }
 0x8c4   :  { %2595 = vrcp.f32 %v1825_v44  ;;  %v1826_v48 = vadd.f32 1.0, %v2592_v45  ;;  %v2594_v19 = vpop.eup %2593 }
 0x8c5   :  { %2597 = vpow2.f32 %v2009_v20  ;;  %v1839_v61 = vadd.f32 1.0, %v2594_v19 }
 0x8c6   :  { %2599 = vrcp.f32 %v1826_v48 }
 0x8ce   :  { %v2596_v51 = vpop.eup %2595 }
 0x8cf   :  { %v2598_v0 = vpop.eup %2597  ;;  %v1847_v52 = vmul.f32 %v2596_v51, %v1845_v50 }
 0x8d0   :  { %v2600_v56 = vpop.eup %2599  ;;  %v1840_v12 = vadd.f32 1.0, %v2598_v0 }
 0x8d1   :  { %v1849_v58 = vadd.f32 %v1847_v52, %v3061_v3  ;;  %v1848_v62 = vmul.f32 %v2600_v56, %v1846_v54  ;;  %v1870_v3 = vpop.permute.xlu1 %1869 }
 0x8d2   :  { %vm1872_vm1 = vcmp.eq.s32.totalorder %v1870_v3, 1 }
 0x8d3   :  { %2601 = vtanh.f32 %v1849_v58  ;;  %v1850_v7 = vadd.f32 %v1848_v62, %v3067_v8 }
 0x8d4   :  { %2603 = vrcp.f32 %v1839_v61 }
 0x8d5   :  { %2605 = vtanh.f32 %v1850_v7 }
 0x8d6   :  { %2607 = vrcp.f32 %v1840_v12 }
 0x8dd   :  { %v2602_v23 = vpop.eup %2601 }
 0x8de   :  { %v2604_v43 = vpop.eup %2603  ;;  %v1853_v16 = vsub.f32 %v3459_v1, %v2602_v23 }
 0x8df   :  { %v2606_v5 = vpop.eup %2605 }
 0x8e0   :  { %v1855_v35 = vmul.f32 %v2604_v43, %v1853_v16  ;;  %v1854_v26 = vsub.f32 %v3462_v38, %v2606_v5  ;;  %v2608_v17 = vpop.eup %2607 }
 0x8e2   :  { %v1857_v29 = vadd.f32 %v2602_v23, %v1855_v35  ;;  %v1856_v4 = vmul.f32 %v2608_v17, %v1854_v26 }
 0x8e4   :  { %v1875_v8 = vsel %vm1871_vm0, %v1857_v29, 0.0  ;;  %v1858_v49 = vadd.f32 %v2606_v5, %v1856_v4  ;;  %v1873_v57 = vsel %vm1871_vm0, %v1857_v29, %v3459_v1 }
 0x8e5   :  { %1878 = vst [vmem:[#allocation9 + $0x70] sm:$0xff] %v1875_v8  ;;  %1885 = vst [vmem:[#allocation10] sm:$0xff] %v1873_v57 }
 0x8e6   :  { %v1876_v46 = vsel %vm1872_vm1, %v1858_v49, 0.0  ;;  %v1874_v37 = vsel %vm1872_vm1, %v1858_v49, %v3462_v38 }
 0x8e7   :  { %1879 = vst [vmem:[#allocation9 + $0x78] sm:$0xff] %v1876_v46  ;;  %1886 = vst [vmem:[#allocation10 + $0x8] sm:$0xff] %v1874_v37 }
 0x8e8   :  { %2711 = shalt.err (!%p2708_p0)
}
 0x8e9   :  { %s2712_s28 = scalar_lea.hbm %s3515_s6, 2048 }
 0x8ea   :  { %p2713_p1 = scmp.ne.s32.totalorder %s3515_s6, %s2712_s28  ;;  %p2716_p2 = scmp.lt.u32.totalorder %s2712_s28, %s3515_s6 }
 0x8ec   :  { %p2718_p3 = pnand %p2716_p2, %p2713_p1 }
 0x8ee   :  { %2721 = shalt.err (!%p2718_p3)
}
 0x8ef   :  { %s2765_s10 = smov 128   ;;  %s2766_s13 = smov 8  }
 0x8f0   :  { %1898 = dma.vmem_to_hbm [thread:$0]  %s1893_s23, 2048, %s3515_s6, [#allocation5], %s2765_s10, %s2765_s10, %s2766_s13  }
 0x8f1   :  { %s2722_s17 = scalar_lea.vmem %s3478_s2, 256  ;;  %p2727_p5 = scmp.lt.s32.totalorder %s3478_s2, %s3478_s2 }
 0x8f2   :  { %p2723_p4 = scmp.ne.s32.totalorder %s3478_s2, %s2722_s17  ;;  %p2728_p6 = scmp.lt.s32.totalorder %s2722_s17, %s2722_s17 }
 0x8f4   :  { %p2729_p7 = por %p2728_p6, %p2727_p5 }
 0x8f6   :  { %p2730_p8 = pnand %p2729_p7, %p2723_p4 }
 0x8f8   :  { %2733 = shalt.err (!%p2730_p8)
}
 0x8f9   :  { %s2734_s3 = scalar_lea.hbm %s3516_s7, 256 }
 0x8fa   :  { %p2735_p9 = scmp.ne.s32.totalorder %s3516_s7, %s2734_s3  ;;  %p2738_p10 = scmp.lt.u32.totalorder %s2734_s3, %s3516_s7 }
 0x8fc   :  { %p2740_p11 = pnand %p2738_p10, %p2735_p9 }
 0x8fe   :  { %2743 = shalt.err (!%p2740_p11)
}
 0x8ff   :  { %1910 = dma.vmem_to_hbm [thread:$0]  %s3478_s2, 256, %s3516_s7, [#allocation11], %s2765_s10, %s2765_s10, %s2766_s13  }
 0x900   :  { %2748 = dma.done.wait [#allocation5], 2048  }
 0x901   :  { %2749 = vsyncadd [#allocation5], 4294965248 }
 0x902   :  { %2750 = dma.done.wait [#allocation11], 256  }
 0x903   :  { %2751 = vsyncadd [#allocation11], 4294967040 }
 0x904   :  { %1917 = vsyncpa [#allocation4], 1 }
 0x905   :  { %1918 = vsyncpa [#allocation7], 1 }
 0x906   :  { %1919 = vsyncpa [#allocation5], 1 }
 0x907   :  { %1920 = vsyncpa [#allocation11], 1 }

</bundles_post_ra>
